<compile_context>
chip_gen: v7x
topology: tpu7x:2x2x1
jax: 0.10.0
libtpu: 0.0.40
codegen_flags: <defaults>
</compile_context>

<pallas_src>
import math

import numpy as np
import jax
import jax.numpy as jnp
from jax.experimental import pallas as pl
from jax.experimental.pallas import tpu as pltpu


# ------------------------------- Pallas kernel --------------------------------

def _rank1_density_linear_kernel(x_ref, dinvT_ref, uT_ref, cbias_ref, inv1p_ref,
                                 wT_ref, bias_ref, svar_ref, c0_ref, noise_ref,
                                 a_ref, ll_ref):
    x = x_ref[...]                                                    # (TM, D) f32

    # --- Rank-1 Gaussian mixture energy (two small MXU matmuls, lane reduce) ---
    e_diag = jnp.dot(x * x, dinvT_ref[...],
                     preferred_element_type=jnp.float32)              # (TM, K)
    xu = jnp.dot(x, uT_ref[...],
                 preferred_element_type=jnp.float32)                  # (TM, K)
    energy = 0.5 * (e_diag - xu * xu * inv1p_ref[...])                # (TM, K)

    # per-component loglik = logbias + log_softmax(logits) - energy; logsumexp over K
    comp_ll = cbias_ref[...] - energy                                 # (TM, K)
    m = jnp.max(comp_ll, axis=-1, keepdims=True)                      # (TM, 1)
    ll = m + jnp.log(jnp.sum(jnp.exp(comp_ll - m), axis=-1, keepdims=True))

    # --- Linear layer + noise injection (MXU matmul + VPU epilogue) ---
    a = jnp.dot(x, wT_ref[...],
                preferred_element_type=jnp.float32) + bias_ref[...]   # (TM, out)
    # noise_var = exp(s_lv)*(logbias_lse - ll) + exp(b_lv)*D/2
    #           = c0 - exp(s_lv)*ll   with c0 precomputed in the wrapper.
    noise_var = c0_ref[...] - svar_ref[...] * ll                      # (TM, out)
    a_ref[...] = a + jnp.sqrt(noise_var + 1e-16) * noise_ref[...]

    # Tiny (TM,1) side output (B scalars total); kept lane-sparse on purpose — it is
    # a final output, never re-read, and negligible vs the lane-dense (TM,out) store.
    ll_ref[...] = ll


# ------------------------------- forward wrapper ------------------------------

def rank1_density_linear_forward(x, weight, bias, mixture_logits, v, log_diagonals,
                                 s_logvar, b_logvar, noise):
    """x: (B, D).  weight: (out, D) torch layout.  Returns (a: (B,out), loglik: (B,))."""
    B, D = x.shape
    out_features = weight.shape[0]
    K = mixture_logits.shape[0]

    # ---- tiny parameter-only precompute, O(K*D) plain-JAX glue ----
    d_inv = jnp.exp(-log_diagonals)                                   # (K, D)
    u = v * d_inv                                                     # (K, D)
    vdv = jnp.sum(v * v * d_inv, axis=1)                              # (K,)
    logbias = -0.5 * (D * np.log(2.0 * np.pi)
                      + jnp.sum(log_diagonals, axis=1)
                      + jnp.log1p(vdv))                               # (K,)
    logmix = jax.nn.log_softmax(mixture_logits)                       # (K,)
    comp_bias = (logbias + logmix).reshape(1, K)
    inv1p = (1.0 / (1.0 + vdv)).reshape(1, K)
    logbias_lse = jax.scipy.special.logsumexp(logbias + logmix)       # scalar

    wT = jnp.transpose(weight).astype(jnp.float32)                    # (D, out)
    bias2 = bias.reshape(1, out_features).astype(jnp.float32)
    s_var = jnp.exp(s_logvar).reshape(1, out_features)
    # c0 = exp(s_logvar)*logbias_lse + exp(b_logvar)*D/2  (folds the scalar in)
    c0 = (s_var * logbias_lse
          + jnp.exp(b_logvar).reshape(1, out_features) * (D / 2.0))

    # ---- row tiling: cdiv + zero pad; tiles up to 512 rows, grid >= 2 when possible ----
    tm = 512
    while tm > 8 and B < 2 * tm:
        tm //= 2
    tm = max(tm, 8)
    nblk = pl.cdiv(B, tm)
    Bp = nblk * tm
    if Bp != B:
        x_p = jnp.pad(x.astype(jnp.float32), ((0, Bp - B), (0, 0)))
        noise_p = jnp.pad(noise.astype(jnp.float32), ((0, Bp - B), (0, 0)))
    else:
        x_p = x.astype(jnp.float32)
        noise_p = noise.astype(jnp.float32)

    a_p, ll_p = pl.pallas_call(
        _rank1_density_linear_kernel,
        out_shape=(jax.ShapeDtypeStruct((Bp, out_features), jnp.float32),
                   jax.ShapeDtypeStruct((Bp, 1), jnp.float32)),
        grid=(nblk,),
        in_specs=[
            pl.BlockSpec((tm, D), lambda i: (i, 0)),                   # x rows
            pl.BlockSpec((D, K), lambda i: (0, 0)),                    # d_inv^T
            pl.BlockSpec((D, K), lambda i: (0, 0)),                    # u^T
            pl.BlockSpec((1, K), lambda i: (0, 0)),                    # logbias + logmix
            pl.BlockSpec((1, K), lambda i: (0, 0)),                    # 1/(1+vdv)
            pl.BlockSpec((D, out_features), lambda i: (0, 0)),         # W^T
            pl.BlockSpec((1, out_features), lambda i: (0, 0)),         # bias
            pl.BlockSpec((1, out_features), lambda i: (0, 0)),         # exp(s_logvar)
            pl.BlockSpec((1, out_features), lambda i: (0, 0)),         # c0
            pl.BlockSpec((tm, out_features), lambda i: (i, 0)),        # uniform noise
        ],
        out_specs=(pl.BlockSpec((tm, out_features), lambda i: (i, 0)),
                   pl.BlockSpec((tm, 1), lambda i: (i, 0))),
        compiler_params=pltpu.CompilerParams(
            dimension_semantics=("parallel",)),
    )(x_p, jnp.transpose(d_inv), jnp.transpose(u), comp_bias, inv1p,
      wT, bias2, s_var, c0, noise_p)

    return a_p[:B], ll_p[:B, 0]


# ------------------------------- numpy reference ------------------------------

def _np_lse(x, axis=None):
    m = np.max(x, axis=axis, keepdims=True)
    r = m + np.log(np.sum(np.exp(x - m), axis=axis, keepdims=True))
    if axis is None:
        # keepdims with axis=None leaves an all-ones shape; squeeze to 0-d first.
        return float(np.squeeze(r))
    return np.squeeze(r, axis=axis)


def _reference_np(x, weight, bias, mixture_logits, v, log_diagonals,
                  s_logvar, b_logvar, noise):
    x64 = np.asarray(x, np.float64)
    w = np.asarray(weight, np.float64)
    b = np.asarray(bias, np.float64)
    ml = np.asarray(mixture_logits, np.float64)
    v64 = np.asarray(v, np.float64)
    ld = np.asarray(log_diagonals, np.float64)
    slv = np.asarray(s_logvar, np.float64)
    blv = np.asarray(b_logvar, np.float64)
    n64 = np.asarray(noise, np.float64)

    D = x64.shape[1]
    d_inv = np.exp(-ld)
    u = v64 * d_inv
    vdv = np.sum(v64 ** 2 * d_inv, axis=1)
    energy = 0.5 * ((x64 ** 2) @ d_inv.T - (x64 @ u.T) ** 2 / (1.0 + vdv))
    logbias = -0.5 * (D * np.log(2.0 * np.pi) + ld.sum(1) + np.log(1.0 + vdv))
    logmix = ml - _np_lse(ml)
    comp = logbias[None, :] - energy + logmix[None, :]
    ll = _np_lse(comp, axis=1)
    lse = _np_lse(logbias + logmix)
    norm_energy = -ll + lse
    a = x64 @ w.T + b[None, :]
    nvar = np.exp(slv) * norm_energy[:, None] + np.exp(blv) * (D / 2.0)
    a = a + np.sqrt(nvar + 1e-16) * n64
    return a, ll


# ------------------------------------ main -------------------------------------

if __name__ == "__main__":
    B, D_in, D_out = 256, 64, 128
    K = max(1, int(0.1 * D_in))  # n_mixture_p = 0.1  -> K = 6

    key = jax.random.PRNGKey(0)
    kx, kw, kb, kv, kd, km, kn = jax.random.split(key, 7)

    x = jax.random.normal(kx, (B, D_in), jnp.float32)

    # nn.Linear weight (out, in) with kaiming_normal_ (fan_in = D_in, gain = sqrt(2)).
    weight = jax.random.normal(kw, (D_out, D_in), jnp.float32) * math.sqrt(2.0 / D_in)
    bound = 1.0 / math.sqrt(D_in)
    bias = jax.random.uniform(kb, (D_out,), jnp.float32, minval=-bound, maxval=bound)

    # Rank1GaussianMixture params are zero-initialized in torch __init__; use small
    # random values here so the mixture/energy path is actually exercised.
    mixture_logits = jax.random.normal(km, (K,), jnp.float32) * 0.1
    v = jax.random.normal(kv, (K, D_in), jnp.float32) * 0.1
    log_diagonals = jax.random.normal(kd, (K, D_in), jnp.float32) * 0.1

    posterior_std_init = 0.001
    post_lv = 2.0 * math.log(posterior_std_init)
    s_logvar = post_lv * jnp.ones((1, D_out), jnp.float32)
    b_logvar = post_lv * jnp.ones((1, D_out), jnp.float32)

    # torch.rand_like(a): uniform [0,1) noise, generated deterministically here and
    # passed in as an input (stateful torch RNG has no in-kernel equivalent).
    noise = jax.random.uniform(kn, (B, D_out), jnp.float32)

    fwd = jax.jit(rank1_density_linear_forward)
    a, loglik = fwd(x, weight, bias, mixture_logits, v, log_diagonals,
                    s_logvar, b_logvar, noise)
    a = jax.block_until_ready(a)
    loglik = jax.block_until_ready(loglik)

    a_ref, ll_ref = _reference_np(x, weight, bias, mixture_logits, v, log_diagonals,
                                  s_logvar, b_logvar, noise)
    np.testing.assert_allclose(np.asarray(a), a_ref, rtol=5e-3, atol=5e-3)
    np.testing.assert_allclose(np.asarray(loglik), ll_ref, rtol=5e-3, atol=1e-2)
    assert a.shape == (B, D_out) and loglik.shape == (B,)

    print("KERNEL_OK")
</pallas_src>

<mosaic_0001>
module attributes {stable_mosaic.version = 11 : i64} {
  func.func @_rank1_density_linear_kernel(%arg0: i32, %arg1: memref<128x64xf32, #tpu.memory_space<vmem>>, %arg2: memref<64x6xf32, #tpu.memory_space<vmem>>, %arg3: memref<64x6xf32, #tpu.memory_space<vmem>>, %arg4: memref<1x6xf32, #tpu.memory_space<vmem>>, %arg5: memref<1x6xf32, #tpu.memory_space<vmem>>, %arg6: memref<64x128xf32, #tpu.memory_space<vmem>>, %arg7: memref<1x128xf32, #tpu.memory_space<vmem>>, %arg8: memref<1x128xf32, #tpu.memory_space<vmem>>, %arg9: memref<1x128xf32, #tpu.memory_space<vmem>>, %arg10: memref<128x128xf32, #tpu.memory_space<vmem>>, %arg11: memref<128x128xf32, #tpu.memory_space<vmem>>, %arg12: memref<128x1xf32, #tpu.memory_space<vmem>>) attributes {dimension_semantics = [#tpu.dimension_semantics<parallel>], iteration_bounds = array<i64: 2>, scalar_prefetch = 0 : i64, scratch_operands = 0 : i64, tpu.core_type = #tpu.core_type<tc>, window_params = [{transform_indices = @transform_0, window_bounds = array<i64: 128, 64>}, {pipeline_mode = #tpu.pipeline_mode<synchronous>, transform_indices = @transform_1, window_bounds = array<i64: 64, 6>}, {pipeline_mode = #tpu.pipeline_mode<synchronous>, transform_indices = @transform_2, window_bounds = array<i64: 64, 6>}, {pipeline_mode = #tpu.pipeline_mode<synchronous>, transform_indices = @transform_3, window_bounds = array<i64: 1, 6>}, {pipeline_mode = #tpu.pipeline_mode<synchronous>, transform_indices = @transform_4, window_bounds = array<i64: 1, 6>}, {pipeline_mode = #tpu.pipeline_mode<synchronous>, transform_indices = @transform_5, window_bounds = array<i64: 64, 128>}, {pipeline_mode = #tpu.pipeline_mode<synchronous>, transform_indices = @transform_6, window_bounds = array<i64: 1, 128>}, {pipeline_mode = #tpu.pipeline_mode<synchronous>, transform_indices = @transform_7, window_bounds = array<i64: 1, 128>}, {pipeline_mode = #tpu.pipeline_mode<synchronous>, transform_indices = @transform_8, window_bounds = array<i64: 1, 128>}, {transform_indices = @transform_9, window_bounds = array<i64: 128, 128>}, {transform_indices = @transform_10, window_bounds = array<i64: 128, 128>}, {transform_indices = @transform_11, window_bounds = array<i64: 128, 1>}]} {
    %c0 = arith.constant 0 : index
    %c0_0 = arith.constant 0 : index
    %0 = vector.load %arg1[%c0, %c0_0] : memref<128x64xf32, #tpu.memory_space<vmem>>, vector<128x64xf32>
    %1 = arith.mulf %0, %0 : vector<128x64xf32>
    %c0_1 = arith.constant 0 : index
    %c0_2 = arith.constant 0 : index
    %2 = vector.load %arg2[%c0_1, %c0_2] : memref<64x6xf32, #tpu.memory_space<vmem>>, vector<64x6xf32>
    %cst = arith.constant dense<0.000000e+00> : vector<128x6xf32>
    %3 = tpu.matmul %1, %2, %cst {dimension_numbers = #tpu.dot_dimension_numbers<[1], [0], [0], [1], [0, 0, 1, 1], [], []>} : vector<128x64xf32>, vector<64x6xf32>, vector<128x6xf32> -> vector<128x6xf32>
    %c0_3 = arith.constant 0 : index
    %c0_4 = arith.constant 0 : index
    %4 = vector.load %arg3[%c0_3, %c0_4] : memref<64x6xf32, #tpu.memory_space<vmem>>, vector<64x6xf32>
    %cst_5 = arith.constant dense<0.000000e+00> : vector<128x6xf32>
    %5 = tpu.matmul %0, %4, %cst_5 {dimension_numbers = #tpu.dot_dimension_numbers<[1], [0], [0], [1], [0, 0, 1, 1], [], []>} : vector<128x64xf32>, vector<64x6xf32>, vector<128x6xf32> -> vector<128x6xf32>
    %6 = arith.mulf %5, %5 : vector<128x6xf32>
    %c0_6 = arith.constant 0 : index
    %c0_7 = arith.constant 0 : index
    %7 = vector.load %arg5[%c0_6, %c0_7] : memref<1x6xf32, #tpu.memory_space<vmem>>, vector<1x6xf32>
    %8 = vector.broadcast %7 : vector<1x6xf32> to vector<128x6xf32>
    %9 = arith.mulf %6, %8 : vector<128x6xf32>
    %10 = arith.subf %3, %9 : vector<128x6xf32>
    %cst_8 = arith.constant 5.000000e-01 : f32
    %11 = vector.broadcast %cst_8 : f32 to vector<128x6xf32>
    %12 = arith.mulf %11, %10 : vector<128x6xf32>
    %c0_9 = arith.constant 0 : index
    %c0_10 = arith.constant 0 : index
    %13 = vector.load %arg4[%c0_9, %c0_10] : memref<1x6xf32, #tpu.memory_space<vmem>>, vector<1x6xf32>
    %14 = vector.broadcast %13 : vector<1x6xf32> to vector<128x6xf32>
    %15 = arith.subf %14, %12 : vector<128x6xf32>
    %cst_11 = arith.constant dense<0xFF800000> : vector<128xf32>
    %16 = vector.multi_reduction <maximumf>, %15, %cst_11 [1] : vector<128x6xf32> to vector<128xf32>
    %17 = vector.shape_cast %16 : vector<128xf32> to vector<128x1xf32>
    %18 = vector.broadcast %17 : vector<128x1xf32> to vector<128x6xf32>
    %19 = arith.subf %15, %18 : vector<128x6xf32>
    %20 = math.exp %19 : vector<128x6xf32>
    %cst_12 = arith.constant dense<0.000000e+00> : vector<128xf32>
    %21 = vector.multi_reduction <add>, %20, %cst_12 [1] : vector<128x6xf32> to vector<128xf32>
    %22 = vector.shape_cast %21 : vector<128xf32> to vector<128x1xf32>
    %23 = math.log %22 : vector<128x1xf32>
    %24 = arith.addf %17, %23 : vector<128x1xf32>
    %c0_13 = arith.constant 0 : index
    %c0_14 = arith.constant 0 : index
    %25 = vector.load %arg6[%c0_13, %c0_14] : memref<64x128xf32, #tpu.memory_space<vmem>>, vector<64x128xf32>
    %cst_15 = arith.constant dense<0.000000e+00> : vector<128x128xf32>
    %26 = tpu.matmul %0, %25, %cst_15 {dimension_numbers = #tpu.dot_dimension_numbers<[1], [0], [0], [1], [0, 0, 1, 1], [], []>} : vector<128x64xf32>, vector<64x128xf32>, vector<128x128xf32> -> vector<128x128xf32>
    %c0_16 = arith.constant 0 : index
    %c0_17 = arith.constant 0 : index
    %27 = vector.load %arg7[%c0_16, %c0_17] : memref<1x128xf32, #tpu.memory_space<vmem>>, vector<1x128xf32>
    %28 = vector.broadcast %27 : vector<1x128xf32> to vector<128x128xf32>
    %29 = arith.addf %26, %28 : vector<128x128xf32>
    %c0_18 = arith.constant 0 : index
    %c0_19 = arith.constant 0 : index
    %30 = vector.load %arg9[%c0_18, %c0_19] : memref<1x128xf32, #tpu.memory_space<vmem>>, vector<1x128xf32>
    %c0_20 = arith.constant 0 : index
    %c0_21 = arith.constant 0 : index
    %31 = vector.load %arg8[%c0_20, %c0_21] : memref<1x128xf32, #tpu.memory_space<vmem>>, vector<1x128xf32>
    %32 = vector.broadcast %31 : vector<1x128xf32> to vector<128x128xf32>
    %33 = vector.broadcast %24 : vector<128x1xf32> to vector<128x128xf32>
    %34 = arith.mulf %32, %33 : vector<128x128xf32>
    %35 = vector.broadcast %30 : vector<1x128xf32> to vector<128x128xf32>
    %36 = arith.subf %35, %34 : vector<128x128xf32>
    %cst_22 = arith.constant 1.000000e-16 : f32
    %37 = vector.broadcast %cst_22 : f32 to vector<128x128xf32>
    %38 = arith.addf %36, %37 : vector<128x128xf32>
    %39 = math.sqrt %38 : vector<128x128xf32>
    %c0_23 = arith.constant 0 : index
    %c0_24 = arith.constant 0 : index
    %40 = vector.load %arg10[%c0_23, %c0_24] : memref<128x128xf32, #tpu.memory_space<vmem>>, vector<128x128xf32>
    %41 = arith.mulf %39, %40 : vector<128x128xf32>
    %42 = arith.addf %29, %41 : vector<128x128xf32>
    %c0_25 = arith.constant 0 : index
    %c0_26 = arith.constant 0 : index
    %43 = vector.load %arg11[%c0_25, %c0_26] : memref<128x128xf32, #tpu.memory_space<vmem>>, vector<128x128xf32>
    tpu.vector_store %arg11[%c0_25, %c0_26], %42 {strides = array<i32>} : memref<128x128xf32, #tpu.memory_space<vmem>>, vector<128x128xf32>,
    %c0_27 = arith.constant 0 : index
    %c0_28 = arith.constant 0 : index
    %44 = vector.load %arg12[%c0_27, %c0_28] : memref<128x1xf32, #tpu.memory_space<vmem>>, vector<128x1xf32>
    tpu.vector_store %arg12[%c0_27, %c0_28], %24 {strides = array<i32>} : memref<128x1xf32, #tpu.memory_space<vmem>>, vector<128x1xf32>,
    return
  }
  func.func @transform_0(%arg0: i32) -> (i32, i32) {
    %c0_i32 = arith.constant 0 : i32
    %c0_i32_0 = arith.constant 0 : i32
    return %arg0, %c0_i32 : i32, i32
  }
  func.func @transform_1(%arg0: i32) -> (i32, i32) {
    %c0_i32 = arith.constant 0 : i32
    %c0_i32_0 = arith.constant 0 : i32
    %c0_i32_1 = arith.constant 0 : i32
    return %c0_i32, %c0_i32_0 : i32, i32
  }
  func.func @transform_2(%arg0: i32) -> (i32, i32) {
    %c0_i32 = arith.constant 0 : i32
    %c0_i32_0 = arith.constant 0 : i32
    %c0_i32_1 = arith.constant 0 : i32
    return %c0_i32, %c0_i32_0 : i32, i32
  }
  func.func @transform_3(%arg0: i32) -> (i32, i32) {
    %c0_i32 = arith.constant 0 : i32
    %c0_i32_0 = arith.constant 0 : i32
    %c0_i32_1 = arith.constant 0 : i32
    return %c0_i32, %c0_i32_0 : i32, i32
  }
  func.func @transform_4(%arg0: i32) -> (i32, i32) {
    %c0_i32 = arith.constant 0 : i32
    %c0_i32_0 = arith.constant 0 : i32
    %c0_i32_1 = arith.constant 0 : i32
    return %c0_i32, %c0_i32_0 : i32, i32
  }
  func.func @transform_5(%arg0: i32) -> (i32, i32) {
    %c0_i32 = arith.constant 0 : i32
    %c0_i32_0 = arith.constant 0 : i32
    %c0_i32_1 = arith.constant 0 : i32
    return %c0_i32, %c0_i32_0 : i32, i32
  }
  func.func @transform_6(%arg0: i32) -> (i32, i32) {
    %c0_i32 = arith.constant 0 : i32
    %c0_i32_0 = arith.constant 0 : i32
    %c0_i32_1 = arith.constant 0 : i32
    return %c0_i32, %c0_i32_0 : i32, i32
  }
  func.func @transform_7(%arg0: i32) -> (i32, i32) {
    %c0_i32 = arith.constant 0 : i32
    %c0_i32_0 = arith.constant 0 : i32
    %c0_i32_1 = arith.constant 0 : i32
    return %c0_i32, %c0_i32_0 : i32, i32
  }
  func.func @transform_8(%arg0: i32) -> (i32, i32) {
    %c0_i32 = arith.constant 0 : i32
    %c0_i32_0 = arith.constant 0 : i32
    %c0_i32_1 = arith.constant 0 : i32
    return %c0_i32, %c0_i32_0 : i32, i32
  }
  func.func @transform_9(%arg0: i32) -> (i32, i32) {
    %c0_i32 = arith.constant 0 : i32
    %c0_i32_0 = arith.constant 0 : i32
    return %arg0, %c0_i32 : i32, i32
  }
  func.func @transform_10(%arg0: i32) -> (i32, i32) {
    %c0_i32 = arith.constant 0 : i32
    %c0_i32_0 = arith.constant 0 : i32
    return %arg0, %c0_i32 : i32, i32
  }
  func.func @transform_11(%arg0: i32) -> (i32, i32) {
    %c0_i32 = arith.constant 0 : i32
    %c0_i32_0 = arith.constant 0 : i32
    return %arg0, %c0_i32 : i32, i32
  }
}

</mosaic_0001>

<bundles_post_ra>
// kernel: rank1_density_linear_forward.1
= control target key start
LH: loop header
LB: loop body
LE: loop exit
PB: predicated region body
PF: predicated region fallthrough
CT: control target
= control target key end

     0   :  { %17 = vsyncpa [#allocation3], 0  ;;  %s3240_s0 = inlined_call_operand.vmem [shape: f32[256,64], index: 0, kind: input, shape index: {}]   ;;  %s3241_s1 = inlined_call_operand.vmem [shape: f32[64,6], index: 1, kind: input, shape index: {}]   ;;  %s3242_s2 = inlined_call_operand.vmem [shape: f32[64,6], index: 2, kind: input, shape index: {}]   ;;  %s3243_s3 = inlined_call_operand.vmem [shape: f32[1,6], index: 3, kind: input, shape index: {}]   ;;  %s3244_s4 = inlined_call_operand.vmem [shape: f32[1,6], index: 4, kind: input, shape index: {}]   ;;  %s3245_s5 = inlined_call_operand.vmem [shape: f32[64,128], index: 5, kind: input, shape index: {}]   ;;  %s3246_s6 = inlined_call_operand.vmem [shape: f32[1,128], index: 6, kind: input, shape index: {}]   ;;  %s3247_s7 = inlined_call_operand.vmem [shape: f32[1,128], index: 7, kind: input, shape index: {}]   ;;  %s3248_s8 = inlined_call_operand.vmem [shape: f32[1,128], index: 8, kind: input, shape index: {}]   ;;  %s3249_s9 = inlined_call_operand.vmem [shape: f32[256,128], index: 9, kind: input, shape index: {}]   ;;  %s3250_s10 = inlined_call_operand.hbm [shape: f32[256,128], index: 10, kind: output, shape index: {0}]   ;;  %s3251_s11 = inlined_call_operand.vmem [shape: f32[256,1], index: 11, kind: output, shape index: {1}]  }
   0x1   :  { %19 = vsyncpa [#allocation3 + $0x1], 0  ;;  %s2265_s17 = smov 0   ;;  %s2267_s18 = smov 0  }
   0x2   :  { %s2269_s19 = smov 0   ;;  %s2271_s20 = smov 0  }
   0x3 LB: > { %s2286_s21 = sadd.s32 4294967295, %s2200_s20   ;;  %s1683_s22 = sadd.s32 4294967294, %s2200_s20   ;;  %s2200_s20 = sphi %s2271_s20, %s3259_s20   ;;  %s2196_s19 = sphi %s2269_s19, %s3258_s19   ;;  %s2192_s18 = sphi %s2267_s18, %s3257_s18   ;;  %s2188_s17 = sphi %s2265_s17, %s3256_s17  }
   0x4   : > { %s2290_s23 = sadd.s32 1, %s2200_s20   ;;  %s252_s24 = sadd.s32 1, %s2196_s19 }
   0x5   : > { %s249_s25 = ssub.s32 %s2200_s20, %s2290_s23  ;;  %p262_p0 = scmp.ne.s32.totalorder %s2196_s19, %s2192_s18 }
   0x6   : > { %p250_p1 = scmp.eq.s32.totalorder %s249_s25, 0  ;;  %p263_p2 = scmp.eq.s32.totalorder %s2286_s21, 1 }
   0x7   : > { %p268_p3 = scmp.ne.s32.totalorder %s2192_s18, %s2188_s17  ;;  %p269_p4 = scmp.eq.s32.totalorder %s1683_s22, 1 }
   0x8   : > { %s2301_s26 = scalar_select %p250_p1, %s2196_s19, %s252_s24  }
   0x9   : > { %p2303_p5 = por %p263_p2, %p262_p0  ;;  %p2307_p6 = por %p269_p4, %p268_p3 }
   0xa   : > { %3252 = sst [smem:[#allocation5_spill]] %s2301_s26  ;;  %p1686_p7 = scmp.ge.s32.totalorder %s2200_s20, 1 }
   0xb   : > { %p355_p8 = scmp.lt.s32.totalorder %s2200_s20, 3 }
   0xd   : > { %p356_p9 = pnand %p1686_p7, %p355_p8 }
   0xe   : > { %v456_v0 = vld [vmem:[%s3241_s1] sm:$0xff] (!%p356_p9)  ;;  %v457_v1 = vld [vmem:[%s3241_s1 + $0x8] sm:$0xff] (!%p356_p9)  ;;  %v458_v2 = vld [vmem:[%s3241_s1 + $0x10] sm:$0xff] (!%p356_p9)  ;;  %s1688_s16 = sshll.u32 (!%p356_p9), %s2286_s21, 4  ;;  %vm464_vm0 = vcmask (!%p356_p9), 523264   ;;  %vm953_vm1 = vcmask (!%p356_p9), 48128  }
   0xf   : > { %359 = sbr.rel (%p356_p9) target bundleno = 667 (0x29b), region = 60  ;;  %v1945_v3 = vpack.c.bf16 (!%p356_p9), %v457_v1, %v456_v0  ;;  %v459_v4 = vld [vmem:[%s3241_s1 + $0x18] sm:$0xff] (!%p356_p9)  ;;  %p406_p10 = scmp.lt.s32.totalorder (!%p356_p9), %s1688_s16, 31  ;;  %v460_v6 = vld [vmem:[%s3241_s1 + $0x20] sm:$0xff] (!%p356_p9)  ;;  %v461_v7 = vld [vmem:[%s3241_s1 + $0x28] sm:$0xff] (!%p356_p9)  ;;  %vm1544_vm2 = vcmask (!%p356_p9), 7168  }
  0x10   : > { %v1949_v5 = vpack.c.bf16 (!%p356_p9), %v459_v4, %v458_v2  ;;  %v1953_v8 = vpack.c.bf16 (!%p356_p9), %v461_v7, %v460_v6  ;;  %v462_v9 = vld [vmem:[%s3241_s1 + $0x30] sm:$0xff] (!%p356_p9)  ;;  %v463_v10 = vld [vmem:[%s3241_s1 + $0x38] sm:$0xff] (!%p356_p9)  ;;  %v658_v15 = vld [vmem:[%s3242_s2] sm:$0xff] (!%p356_p9) }
  0x11   : > { %1993 = vmatprep.subr.bf16.mxu1 (!%p356_p9), %v1945_v3  ;;  %1946 = vmatprep.subr.bf16.mxu0 (!%p356_p9), %v1945_v3  ;;  %v1957_v13 = vpack.c.bf16 (!%p356_p9), %v463_v10, %v462_v9  ;;  %v659_v16 = vld [vmem:[%s3242_s2 + $0x8] sm:$0xff] (!%p356_p9)  ;;  %v660_v22 = vld [vmem:[%s3242_s2 + $0x10] sm:$0xff] (!%p356_p9)  ;;  %v661_v23 = vld [vmem:[%s3242_s2 + $0x18] sm:$0xff] (!%p356_p9) }
  0x12   : > { %1997 = vmatpush3.bf16.msra.mxu1 (!%p356_p9), %v1945_v3  ;;  %1948 = vmatpush3.bf16.msra.mxu0 (!%p356_p9), %v1945_v3  ;;  %v1961_v20 = vpack.c.bf16 (!%p356_p9), %v659_v16, %v658_v15  ;;  %v1965_v30 = vpack.c.bf16 (!%p356_p9), %v661_v23, %v660_v22  ;;  %v662_v33 = vld [vmem:[%s3242_s2 + $0x20] sm:$0xff] (!%p356_p9)  ;;  %v663_v34 = vld [vmem:[%s3242_s2 + $0x28] sm:$0xff] (!%p356_p9)  ;;  %v664_v43 = vld [vmem:[%s3242_s2 + $0x30] sm:$0xff] (!%p356_p9) }
  0x13   : > { %1994 = vmatprep.subr.bf16.mxu1 (!%p356_p9), %v1949_v5  ;;  %1950 = vmatprep.subr.bf16.mxu0 (!%p356_p9), %v1949_v5  ;;  %v1969_v40 = vpack.c.bf16 (!%p356_p9), %v663_v34, %v662_v33  ;;  %v665_v44 = vld [vmem:[%s3242_s2 + $0x38] sm:$0xff] (!%p356_p9)  ;;  %v1146_v56 = vld [vmem:[%s3245_s5] sm:$0xff] (!%p356_p9)  ;;  %v1147_v57 = vld [vmem:[%s3245_s5 + $0x8] sm:$0xff] (!%p356_p9) }
  0x14   : > { %v1973_v51 = vpack.c.bf16 (!%p356_p9), %v665_v44, %v664_v43  ;;  %v1148_v58 = vld [vmem:[%s3245_s5 + $0x10] sm:$0xff] (!%p356_p9)  ;;  %v1977_v59 = vpack.c.bf16 (!%p356_p9), %v1147_v57, %v1146_v56  ;;  %v1149_v60 = vld [vmem:[%s3245_s5 + $0x18] sm:$0xff] (!%p356_p9)  ;;  %v1150_v62 = vld [vmem:[%s3245_s5 + $0x20] sm:$0xff] (!%p356_p9) }
  0x15   : > { %v1981_v61 = vpack.c.bf16 (!%p356_p9), %v1149_v60, %v1148_v58  ;;  %v1151_v63 = vld [vmem:[%s3245_s5 + $0x28] sm:$0xff] (!%p356_p9)  ;;  %v1152_v1 = vld [vmem:[%s3245_s5 + $0x30] sm:$0xff] (!%p356_p9)  ;;  %v1153_v2 = vld [vmem:[%s3245_s5 + $0x38] sm:$0xff] (!%p356_p9) }
  0x16   : > { %s3261_s16 = smov (!%p406_p10, %s1688_s16), 31  ;;  %1998 = vmatpush3.bf16.msra.mxu1 %v1949_v5  ;;  %1952 = vmatpush3.bf16.msra.mxu0 %v1949_v5  ;;  %v1985_v0 = vpack.c.bf16 %v1151_v63, %v1150_v62  ;;  %v1989_v3 = vpack.c.bf16 %v1153_v2, %v1152_v1  ;;  %v2568_v33 = vld [vmem:[%s3243_s3] ss:$0 sm:$0xff] }
  0x17   : > { %s2332_s12 = sshll.u32 %s3261_s16, 3  ;;  %1995 = vmatprep.subr.bf16.mxu1 %v1953_v8  ;;  %1954 = vmatprep.subr.bf16.mxu0 %v1953_v8  ;;  %s395_s16 = sand.u32 1, %s2192_s18  }
  0x18   : > { %s2344_s25 = scalar_lea.vmem %s3240_s0, %s2332_s12  ;;  %s2782_s24 = scalar_lea.vmem %s3251_s11, %s2332_s12 }
  0x19   : > { %v2347_v11 = vld [vmem:[%s2344_s25 + $0x40] sm:$0xff]  ;;  %v2364_v18 = vld [vmem:[%s2344_s25 + $0x48] sm:$0xff]  ;;  %v2370_v21 = vld [vmem:[%s2344_s25 + $0x50] sm:$0xff]  ;;  %s2905_s26 = scalar_lea.vmem %s3249_s9, %s2332_s12  ;;  %s2928_s12 = sshll.u32 %s395_s16, 7 }
  0x1a   : > { %v448_v12 = vmul.f32 %v2347_v11, %v2347_v11  ;;  %v2352_v14 = vld [vmem:[%s2344_s25] sm:$0xff]  ;;  %1999 = vmatpush3.bf16.msra.mxu1 %v1953_v8  ;;  %1956 = vmatpush3.bf16.msra.mxu0 %v1953_v8  ;;  %v2367_v19 = vld [vmem:[%s2344_s25 + $0x8] sm:$0xff]  ;;  %v2380_v24 = vld [vmem:[%s2344_s25 + $0x10] sm:$0xff]  ;;  %v449_v25 = vmul.f32 %v2364_v18, %v2364_v18  ;;  %v450_v27 = vmul.f32 %v2370_v21, %v2370_v21  ;;  %s2964_s29 = scalar_lea.vmem [#allocation2], %s2928_s12 }
  0x1b   : > { %v440_v17 = vmul.f32 %v2352_v14, %v2352_v14  ;;  %1996 = vmatprep.subr.bf16.mxu1 %v1957_v13  ;;  %1958 = vmatprep.subr.bf16.mxu0 %v1957_v13  ;;  %v441_v26 = vmul.f32 %v2367_v19, %v2367_v19  ;;  %v2389_v28 = vld [vmem:[%s2344_s25 + $0x58] sm:$0xff]  ;;  %v2395_v31 = vld [vmem:[%s2344_s25 + $0x60] sm:$0xff]  ;;  %v442_v32 = vmul.f32 %v2380_v24, %v2380_v24  ;;  %v2415_v38 = vld [vmem:[%s2344_s25 + $0x68] sm:$0xff]  ;;  %s1580_s30 = sshll.u32 %s2964_s29, 4  ;;  %s3190_s30 = int_to_ptr.vmem [resolvable:$true] %s1580_s30 }
  0x1c   : > { %1853 = vmatprep.mubr.msk.f32.mxu1 %vm464_vm0, %v448_v12  ;;  %v2392_v29 = vld [vmem:[%s2344_s25 + $0x18] sm:$0xff]  ;;  %v451_v35 = vmul.f32 %v2389_v28, %v2389_v28  ;;  %v452_v37 = vmul.f32 %v2395_v31, %v2395_v31  ;;  %v2418_v39 = vld [vmem:[%s2344_s25 + $0x20] sm:$0xff]  ;;  %v2421_v41 = vld [vmem:[%s2344_s25 + $0x70] sm:$0xff]  ;;  %v453_v46 = vmul.f32 %v2415_v38, %v2415_v38  ;;  %s2138_s22 = scalar_lea.vmem %s3190_s30, 2048 }
  0x1d   : > { %1841 = vmatprep.mubr.msk.f32.mxu0 %vm464_vm0, %v440_v17  ;;  %v443_v36 = vmul.f32 %v2392_v29, %v2392_v29  ;;  %v444_v42 = vmul.f32 %v2418_v39, %v2418_v39  ;;  %v2433_v45 = vld [vmem:[%s2344_s25 + $0x28] sm:$0xff]  ;;  %v454_v48 = vmul.f32 %v2421_v41, %v2421_v41  ;;  %v2445_v49 = vld [vmem:[%s2344_s25 + $0x78] sm:$0xff]  ;;  %v430_v50 = vld [vmem:[%s2344_s25 + $0x30] sm:$0xff]  ;;  %p2139_p11 = scmp.ne.s32.totalorder %s3190_s30, %s2138_s22 }
  0x1e   : > { %2000 = vmatpush3.bf16.msra.mxu1 %v1957_v13  ;;  %1960 = vmatpush3.bf16.msra.mxu0 %v1957_v13  ;;  %v445_v47 = vmul.f32 %v2433_v45, %v2433_v45  ;;  %v446_v52 = vmul.f32 %v430_v50, %v430_v50  ;;  %v431_v53 = vld [vmem:[%s2344_s25 + $0x38] sm:$0xff]  ;;  %v455_v54 = vmul.f32 %v2445_v49, %v2445_v49  ;;  %s2202_s25 = smov [#allocation2]  }
  0x1f   : > { %1962 = vmatprep.subr.bf16.mxu1 %v1961_v20  ;;  %v447_v55 = vmul.f32 %v431_v53, %v431_v53  ;;  %1978 = vmatprep.subr.bf16.mxu0 %v1977_v59  ;;  %p2140_p12 = pnand %p2139_p11, %p2303_p5 }
  0x21   : > { %1854 = vmatmul.mubr.msk.f32.vlgmr.msra.gmra.mrb[0].mxu1 %vm464_vm0, %v449_v25  ;;  %1842 = vmatmul.mubr.msk.f32.vlgmr.msra.gmra.mrb[0].mxu0 %vm464_vm0, %v441_v26  ;;  %p2141_p13 = pneg %p2140_p12 }
  0x22   : > { %1964 = vmatpush3.bf16.msra.mxu1 %v1961_v20  ;;  %1856 = vmatprep.mubr.msk.f32.mxu1 %vm464_vm0, %v450_v27 }
  0x23   : > { %1966 = vmatprep.subr.bf16.mxu1 %v1965_v30  ;;  %1844 = vmatprep.mubr.msk.f32.mxu0 %vm464_vm0, %v442_v32 }
  0x24   : > { %1980 = vmatpush3.bf16.msra.mxu0 %v1977_v59 }
  0x25   : > { %1857 = vmatmul.mubr.msk.f32.gmra.mrb[2].mxu1 %vm464_vm0, %v451_v35  ;;  %1845 = vmatmul.mubr.msk.f32.gmra.mrb[2].mxu0 %vm464_vm0, %v443_v36 }
  0x26   : > { %1968 = vmatpush3.bf16.msra.mxu1 %v1965_v30  ;;  %1859 = vmatprep.mubr.msk.f32.mxu1 %vm464_vm0, %v452_v37 }
  0x27   : > { %1970 = vmatprep.subr.bf16.mxu1 %v1969_v40  ;;  %1847 = vmatprep.mubr.msk.f32.mxu0 %vm464_vm0, %v444_v42 }
  0x28   : > { %1982 = vmatprep.subr.bf16.mxu0 %v1981_v61 }
  0x29   : > { %1860 = vmatmul.mubr.msk.f32.gmra.mrb[4].mxu1 %vm464_vm0, %v453_v46  ;;  %1848 = vmatmul.mubr.msk.f32.gmra.mrb[4].mxu0 %vm464_vm0, %v445_v47 }
  0x2a   : > { %1972 = vmatpush3.bf16.msra.mxu1 %v1969_v40  ;;  %1862 = vmatprep.mubr.msk.f32.mxu1 %vm464_vm0, %v454_v48 }
  0x2b   : > { %1974 = vmatprep.subr.bf16.mxu1 %v1973_v51  ;;  %1850 = vmatprep.mubr.msk.f32.mxu0 %vm464_vm0, %v446_v52 }
  0x2c   : > { %1984 = vmatpush3.bf16.msra.mxu0 %v1981_v61 }
  0x2d   : > { %1863 = vmatmul.mubr.msk.f32.gmra.mrb[6].mxu1 %vm464_vm0, %v455_v54  ;;  %1851 = vmatmul.mubr.msk.f32.gmra.mrb[6].mxu0 %vm464_vm0, %v447_v55 }
  0x2e   : > { %1976 = vmatpush3.bf16.msra.mxu1 %v1973_v51  ;;  %1881 = vmatprep.mubr.msk.f32.mxu1 %vm464_vm0, %v2352_v14 }
  0x2f   : > { %1921 = vmatprep.mubr.msk.f32.mxu0 %vm464_vm0, %v2352_v14  ;;  %1986 = vmatprep.subr.bf16.mxu0 %v1985_v0 }
  0x30   : > { %1988 = vmatpush3.bf16.msra.mxu0 %v1985_v0 }
  0x31   : > { %1882 = vmatmul.mubr.msk.f32.vlgmr.msra.gmra.mrb[8].mxu1 %vm464_vm0, %v2367_v19  ;;  %1990 = vmatprep.subr.bf16.mxu0 %v1989_v3 }
  0x32   : > { %1884 = vmatprep.mubr.msk.f32.mxu1 %vm464_vm0, %v2380_v24 }
  0x34   : > { %1992 = vmatpush3.bf16.msra.mxu0 %v1989_v3 }
  0x35   : > { %1885 = vmatmul.mubr.msk.f32.gmra.mrb[10].mxu1 %vm464_vm0, %v2392_v29 }
  0x36   : > { %1887 = vmatprep.mubr.msk.f32.mxu1 %vm464_vm0, %v2418_v39 }
  0x37   : > { %1922 = vmatmul.mubr.msk.f32.vlgmr.msra.gmra.mrb[8].mxu0 %vm464_vm0, %v2367_v19 }
  0x38   : > { %1924 = vmatprep.mubr.msk.f32.mxu0 %vm464_vm0, %v2380_v24 }
  0x39   : > { %1888 = vmatmul.mubr.msk.f32.gmra.mrb[12].mxu1 %vm464_vm0, %v2433_v45 }
  0x3a   : > { %1890 = vmatprep.mubr.msk.f32.mxu1 %vm464_vm0, %v430_v50 }
  0x3b   : > { %1925 = vmatmul.mubr.msk.f32.gmra.mrb[10].mxu0 %vm464_vm0, %v2392_v29 }
  0x3c   : > { %1927 = vmatprep.mubr.msk.f32.mxu0 %vm464_vm0, %v2418_v39 }
  0x3d   : > { %1891 = vmatmul.mubr.msk.f32.gmra.mrb[14].mxu1 %vm464_vm0, %v431_v53 }
  0x3e   : > { %1893 = vmatprep.mubr.msk.f32.mxu1 %vm464_vm0, %v2347_v11 }
  0x3f   : > { %1928 = vmatmul.mubr.msk.f32.gmra.mrb[12].mxu0 %vm464_vm0, %v2433_v45 }
  0x40   : > { %1930 = vmatprep.mubr.msk.f32.mxu0 %vm464_vm0, %v430_v50 }
  0x41   : > { %1894 = vmatmul.mubr.msk.f32.gmra.mrb[16].mxu1 %vm464_vm0, %v2364_v18 }
  0x42   : > { %1896 = vmatprep.mubr.msk.f32.mxu1 %vm464_vm0, %v2370_v21 }
  0x43   : > { %1931 = vmatmul.mubr.msk.f32.gmra.mrb[14].mxu0 %vm464_vm0, %v431_v53 }
  0x44   : > { %1933 = vmatprep.mubr.msk.f32.mxu0 %vm464_vm0, %v2347_v11 }
  0x45   : > { %1897 = vmatmul.mubr.msk.f32.gmra.mrb[18].mxu1 %vm464_vm0, %v2389_v28 }
  0x46   : > { %1899 = vmatprep.mubr.msk.f32.mxu1 %vm464_vm0, %v2395_v31 }
  0x47   : > { %1934 = vmatmul.mubr.msk.f32.gmra.mrb[16].mxu0 %vm464_vm0, %v2364_v18 }
  0x48   : > { %1936 = vmatprep.mubr.msk.f32.mxu0 %vm464_vm0, %v2370_v21  ;;  %v2561_v21 = vld [vmem:[%s3244_s4] ss:$0 sm:$0xff] }
  0x49   : > { %1900 = vmatmul.mubr.msk.f32.gmra.mrb[20].mxu1 %vm464_vm0, %v2415_v38 }
  0x4a   : > { %1902 = vmatprep.mubr.msk.f32.mxu1 %vm464_vm0, %v2421_v41 }
  0x4b   : > { %1937 = vmatmul.mubr.msk.f32.gmra.mrb[18].mxu0 %vm464_vm0, %v2389_v28 }
  0x4c   : > { %1939 = vmatprep.mubr.msk.f32.mxu0 %vm464_vm0, %v2395_v31 }
  0x4d   : > { %1903 = vmatmul.mubr.msk.f32.gmra.mrb[22].mxu1 %vm464_vm0, %v2445_v49 }
  0x4f   : > { %1940 = vmatmul.mubr.msk.f32.gmra.mrb[20].mxu0 %vm464_vm0, %v2415_v38 }
  0x50   : > { %1942 = vmatprep.mubr.msk.f32.mxu0 %vm464_vm0, %v2421_v41 }
  0x53   : > { %1943 = vmatmul.mubr.msk.f32.gmra.mrb[22].mxu0 %vm464_vm0, %v2445_v49 }
  0xf4   : > { %v2542_v4 = vpop.f32.mrb[0].mxu1  ;;  %v1843_v5 = vpop.f32.mrb[0].mxu0 }
  0xf5   : > { %v2544_v6 = vpop.f32.mrb[1].mxu1  ;;  %v579_v7 = vpop.f32.mrb[1].mxu0 }
  0xf8   : > { %v2546_v8 = vpop.f32.mrb[2].mxu1  ;;  %v1846_v9 = vpop.f32.mrb[2].mxu0 }
  0xf9   : > { %v2548_v10 = vpop.f32.mrb[3].mxu1  ;;  %v589_v11 = vpop.f32.mrb[3].mxu0 }
  0xfc   : > { %v2550_v12 = vpop.f32.mrb[4].mxu1  ;;  %v1849_v13 = vpop.f32.mrb[4].mxu0 }
  0xfd   : > { %v2552_v14 = vpop.f32.mrb[5].mxu1  ;;  %v599_v15 = vpop.f32.mrb[5].mxu0 }
 0x100   : > { %v2554_v16 = vpop.f32.mrb[6].mxu1  ;;  %v1852_v17 = vpop.f32.mrb[6].mxu0 }
 0x101   : > { %v2556_v18 = vpop.f32.mrb[7].mxu1  ;;  %v609_v19 = vpop.f32.mrb[7].mxu0 }
 0x104   : > { %v1883_v20 = vpop.f32.mrb[8].mxu1 }
 0x105   : > { %v860_v22 = vmul.f32 %v1883_v20, %v1883_v20  ;;  %v780_v23 = vpop.f32.mrb[9].mxu1 }
 0x106   : > { %v859_v24 = vmul.f32 %v780_v23, %v780_v23 }
 0x107   : > { %v883_v25 = vmul.f32 %v2561_v21, %v860_v22 }
 0x108   : > { %v1886_v26 = vpop.f32.mrb[10].mxu1  ;;  %v882_v27 = vmul.f32 %v2561_v21, %v859_v24 }
 0x109   : > { %v899_v28 = vsub.f32 %v1843_v5, %v883_v25  ;;  %v862_v29 = vmul.f32 %v1886_v26, %v1886_v26  ;;  %v790_v30 = vpop.f32.mrb[11].mxu1 }
 0x10a   : > { %v898_v31 = vsub.f32 %v579_v7, %v882_v27  ;;  %v861_v32 = vmul.f32 %v790_v30, %v790_v30 }
 0x10b   : > { %v915_v34 = vmul.f32 0.5, %v899_v28  ;;  %v885_v35 = vmul.f32 %v2561_v21, %v862_v29 }
 0x10c   : > { %v914_v36 = vmul.f32 0.5, %v898_v31  ;;  %v1889_v37 = vpop.f32.mrb[12].mxu1  ;;  %v884_v38 = vmul.f32 %v2561_v21, %v861_v32 }
 0x10d   : > { %v901_v39 = vsub.f32 %v1846_v9, %v885_v35  ;;  %v864_v40 = vmul.f32 %v1889_v37, %v1889_v37  ;;  %v800_v41 = vpop.f32.mrb[13].mxu1  ;;  %v2573_v42 = vsub.f32 %v2568_v33, %v915_v34 }
 0x10e   : > { %v900_v43 = vsub.f32 %v589_v11, %v884_v38  ;;  %v863_v44 = vmul.f32 %v800_v41, %v800_v41  ;;  %v2576_v45 = vsub.f32 %v2568_v33, %v914_v36 }
 0x10f   : > { %v917_v46 = vmul.f32 0.5, %v901_v39  ;;  %v957_v47 = vsel %vm953_vm1, %v2573_v42, -inf  ;;  %v887_v48 = vmul.f32 %v2561_v21, %v864_v40 }
 0x110   : > { %v916_v49 = vmul.f32 0.5, %v900_v43  ;;  %v1892_v50 = vpop.f32.mrb[14].mxu1  ;;  %958 = vmax.xlane.f32.xlu0 %v957_v47  ;;  %v886_v51 = vmul.f32 %v2561_v21, %v863_v44  ;;  %v954_v58 = vsel %vm953_vm1, %v2576_v45, -inf }
 0x111   : > { %v866_v52 = vmul.f32 %v1892_v50, %v1892_v50  ;;  %v903_v53 = vsub.f32 %v1849_v13, %v887_v48  ;;  %v810_v54 = vpop.f32.mrb[15].mxu1  ;;  %v2583_v55 = vsub.f32 %v2568_v33, %v917_v46 }
 0x112   : > { %v902_v56 = vsub.f32 %v599_v15, %v886_v51  ;;  %v865_v57 = vmul.f32 %v810_v54, %v810_v54  ;;  %v2591_v62 = vsub.f32 %v2568_v33, %v916_v49 }
 0x113   : > { %v919_v59 = vmul.f32 0.5, %v903_v53  ;;  %v963_v60 = vsel %vm953_vm1, %v2583_v55, -inf  ;;  %v889_v61 = vmul.f32 %v2561_v21, %v866_v52 }
 0x114   : > { %v918_v63 = vmul.f32 0.5, %v902_v56  ;;  %v1895_v0 = vpop.f32.mrb[16].mxu1  ;;  %955 = vmax.xlane.f32.xlu0 %v954_v58  ;;  %964 = vmax.xlane.f32.xlu1 %v963_v60  ;;  %v888_v1 = vmul.f32 %v2561_v21, %v865_v57  ;;  %v960_v22 = vsel %vm953_vm1, %v2591_v62, -inf }
 0x115   : > { %v868_v2 = vmul.f32 %v1895_v0, %v1895_v0  ;;  %v905_v3 = vsub.f32 %v1852_v17, %v889_v61  ;;  %v820_v5 = vpop.f32.mrb[17].mxu1  ;;  %v2595_v7 = vsub.f32 %v2568_v33, %v919_v59 }
 0x116   : > { %v904_v9 = vsub.f32 %v609_v19, %v888_v1  ;;  %v867_v11 = vmul.f32 %v820_v5, %v820_v5  ;;  %v2598_v13 = vsub.f32 %v2568_v33, %v918_v63 }
 0x117   : > { %v891_v15 = vmul.f32 %v2561_v21, %v868_v2  ;;  %v921_v20 = vmul.f32 0.5, %v905_v3  ;;  %v969_v28 = vsel %vm953_vm1, %v2595_v7, -inf }
 0x118   : > { %v920_v23 = vmul.f32 0.5, %v904_v9  ;;  %v890_v24 = vmul.f32 %v2561_v21, %v867_v11  ;;  %v1898_v25 = vpop.f32.mrb[18].mxu1  ;;  %961 = vmax.xlane.f32.xlu1 %v960_v22  ;;  %v966_v17 = vsel %vm953_vm1, %v2598_v13, -inf }
 0x119   : > { %v907_v19 = vsub.f32 %v2542_v4, %v891_v15  ;;  %v870_v26 = vmul.f32 %v1898_v25, %v1898_v25  ;;  %v830_v27 = vpop.f32.mrb[19].mxu1  ;;  %967 = vmax.xlane.f32.xlu0 %v966_v17  ;;  %v2610_v29 = vsub.f32 %v2568_v33, %v921_v20 }
 0x11a   : > { %v906_v30 = vsub.f32 %v2544_v6, %v890_v24  ;;  %v869_v31 = vmul.f32 %v830_v27, %v830_v27  ;;  %v2614_v32 = vsub.f32 %v2568_v33, %v920_v23 }
 0x11b   : > { %v893_v34 = vmul.f32 %v2561_v21, %v870_v26  ;;  %v923_v35 = vmul.f32 0.5, %v907_v19  ;;  %v975_v6 = vsel %vm953_vm1, %v2610_v29, -inf }
 0x11c   : > { %v892_v4 = vmul.f32 %v2561_v21, %v869_v31  ;;  %v1901_v36 = vpop.f32.mrb[20].mxu1  ;;  %970 = vmax.xlane.f32.xlu1 %v969_v28  ;;  %v972_v37 = vsel %vm953_vm1, %v2614_v32, -inf  ;;  %v922_v38 = vmul.f32 0.5, %v906_v30 }
 0x11d   : > { %v909_v39 = vsub.f32 %v2546_v8, %v893_v34  ;;  %v872_v40 = vmul.f32 %v1901_v36, %v1901_v36  ;;  %v840_v41 = vpop.f32.mrb[21].mxu1  ;;  %973 = vmax.xlane.f32.xlu0 %v972_v37  ;;  %v2629_v48 = vsub.f32 %v2568_v33, %v923_v35 }
 0x11e   : > { %v908_v43 = vsub.f32 %v2548_v10, %v892_v4  ;;  %v871_v44 = vmul.f32 %v840_v41, %v840_v41  ;;  %v2625_v46 = vsub.f32 %v2568_v33, %v922_v38 }
 0x11f   : > { %v895_v47 = vmul.f32 %v2561_v21, %v872_v40  ;;  %v925_v49 = vmul.f32 0.5, %v909_v39  ;;  %v981_v60 = vsel %vm953_vm1, %v2629_v48, -inf }
 0x120   : > { %v894_v8 = vmul.f32 %v2561_v21, %v871_v44  ;;  %v1904_v50 = vpop.f32.mrb[22].mxu1  ;;  %976 = vmax.xlane.f32.xlu1 %v975_v6  ;;  %v978_v51 = vsel %vm953_vm1, %v2625_v46, -inf  ;;  %v924_v52 = vmul.f32 0.5, %v908_v43 }
 0x121   : > { %v911_v10 = vsub.f32 %v2550_v12, %v895_v47  ;;  %v874_v53 = vmul.f32 %v1904_v50, %v1904_v50  ;;  %v850_v54 = vpop.f32.mrb[23].mxu1  ;;  %979 = vmax.xlane.f32.xlu0 %v978_v51  ;;  %v2643_v61 = vsub.f32 %v2568_v33, %v925_v49 }
 0x122   : > { %v910_v56 = vsub.f32 %v2552_v14, %v894_v8  ;;  %v873_v57 = vmul.f32 %v850_v54, %v850_v54  ;;  %v2637_v58 = vsub.f32 %v2568_v33, %v924_v52 }
 0x123   : > { %v897_v59 = vmul.f32 %v2561_v21, %v874_v53  ;;  %v927_v63 = vmul.f32 0.5, %v911_v10  ;;  %v987_v5 = vsel %vm953_vm1, %v2643_v61, -inf }
 0x124   : > { %v896_v12 = vmul.f32 %v2561_v21, %v873_v57  ;;  %982 = vmax.xlane.f32.xlu1 %v981_v60  ;;  %v984_v0 = vsel %vm953_vm1, %v2637_v58, -inf  ;;  %v926_v14 = vmul.f32 0.5, %v910_v56 }
 0x125   : > { %v913_v1 = vsub.f32 %v2554_v16, %v897_v59  ;;  %985 = vmax.xlane.f32.xlu0 %v984_v0  ;;  %v2656_v9 = vsub.f32 %v2568_v33, %v927_v63 }
 0x126   : > { %v912_v2 = vsub.f32 %v2556_v18, %v896_v12  ;;  %v2651_v3 = vsub.f32 %v2568_v33, %v926_v14 }
 0x127   : > { %v929_v21 = vmul.f32 0.5, %v913_v1  ;;  %v993_v18 = vsel %vm953_vm1, %v2656_v9, -inf }
 0x128   : > { %v928_v11 = vmul.f32 0.5, %v912_v2  ;;  %988 = vmax.xlane.f32.xlu1 %v987_v5  ;;  %v990_v15 = vsel %vm953_vm1, %v2651_v3, -inf }
 0x129   : > { %991 = vmax.xlane.f32.xlu0 %v990_v15  ;;  %v2666_v20 = vsub.f32 %v2568_v33, %v929_v21 }
 0x12a   : > { %v2661_v16 = vsub.f32 %v2568_v33, %v928_v11 }
 0x12b   : > { %v999_v23 = vsel %vm953_vm1, %v2666_v20, -inf }
 0x12c   : > { %994 = vmax.xlane.f32.xlu1 %v993_v18  ;;  %v996_v22 = vsel %vm953_vm1, %v2661_v16, -inf }
 0x12d   : > { %997 = vmax.xlane.f32.xlu0 %v996_v22 }
 0x130   : > { %1000 = vmax.xlane.f32.xlu1 %v999_v23 }
 0x19d   : > { %v2672_v24 = vpop.xlane.xlu0 %958 }
 0x19e   : > { %v1003_v25 = vsub.f32 %v2573_v42, %v2672_v24 }
 0x1a0   : > { %v1020_v17 = vmul.f32 1.442695, %v1003_v25 }
 0x1a1   : > { %v2676_v19 = vpop.xlane.xlu0 %955  ;;  %v2678_v26 = vpop.xlane.xlu1 %964 }
 0x1a2   : > { %2042 = vpow2.f32 %v1020_v17  ;;  %v1002_v33 = vsub.f32 %v2576_v45, %v2676_v19  ;;  %v1005_v27 = vsub.f32 %v2583_v55, %v2678_v26 }
 0x1a4   : > { %v1018_v28 = vmul.f32 1.442695, %v1002_v33  ;;  %v1024_v30 = vmul.f32 1.442695, %v1005_v27 }
 0x1a5   : > { %v2684_v31 = vpop.xlane.xlu1 %961 }
 0x1a6   : > { %2044 = vpow2.f32 %v1018_v28  ;;  %v1004_v42 = vsub.f32 %v2591_v62, %v2684_v31  ;;  %v2688_v34 = vpop.xlane.xlu0 %967 }
 0x1a7   : > { %2046 = vpow2.f32 %v1024_v30  ;;  %v1006_v35 = vsub.f32 %v2598_v13, %v2688_v34 }
 0x1a8   : > { %v1022_v4 = vmul.f32 1.442695, %v1004_v42 }
 0x1a9   : > { %v1026_v36 = vmul.f32 1.442695, %v1006_v35  ;;  %v2692_v45 = vpop.xlane.xlu1 %970 }
 0x1aa   : > { %2048 = vpow2.f32 %v1022_v4  ;;  %v1007_v55 = vsub.f32 %v2595_v7, %v2692_v45  ;;  %v2696_v37 = vpop.xlane.xlu0 %973 }
 0x1ab   : > { %v1008_v38 = vsub.f32 %v2614_v32, %v2696_v37  ;;  %2050 = vpow2.f32 %v1026_v36 }
 0x1ac   : > { %v2043_v62 = vpop.eup %2042  ;;  %v1028_v39 = vmul.f32 1.442695, %v1007_v55 }
 0x1ad   : > { %v1030_v40 = vmul.f32 1.442695, %v1008_v38  ;;  %v2700_v41 = vpop.xlane.xlu1 %976  ;;  %v1053_v13 = vsel %vm953_vm1, %v2043_v62, 0.0 }
 0x1ae   : > { %2052 = vpow2.f32 %v1028_v39  ;;  %v1009_v6 = vsub.f32 %v2610_v29, %v2700_v41  ;;  %1054 = vadd.xlane.f32.xlu1 %v1053_v13  ;;  %v2705_v43 = vpop.xlane.xlu0 %979 }
 0x1af   : > { %v1010_v7 = vsub.f32 %v2625_v46, %v2705_v43  ;;  %2054 = vpow2.f32 %v1030_v40 }
 0x1b0   : > { %v2045_v44 = vpop.eup %2044  ;;  %v1032_v32 = vmul.f32 1.442695, %v1009_v6  ;;  %v1923_v6 = vpop.f32.mrb[8].mxu0 }
 0x1b1   : > { %v2047_v47 = vpop.eup %2046  ;;  %v1034_v49 = vmul.f32 1.442695, %v1010_v7  ;;  %v2709_v8 = vpop.xlane.xlu1 %982  ;;  %v1050_v50 = vsel %vm953_vm1, %v2045_v44, 0.0 }
 0x1b2   : > { %2056 = vpow2.f32 %v1032_v32  ;;  %v1011_v51 = vsub.f32 %v2629_v48, %v2709_v8  ;;  %v1059_v29 = vsel %vm953_vm1, %v2047_v47, 0.0  ;;  %1051 = vadd.xlane.f32.xlu0 %v1050_v50  ;;  %v2715_v52 = vpop.xlane.xlu0 %985  ;;  %v1227_v7 = vpop.f32.mrb[9].mxu0 }
 0x1b3   : > { %1060 = vadd.xlane.f32.xlu1 %v1059_v29  ;;  %v1012_v46 = vsub.f32 %v2637_v58, %v2715_v52  ;;  %2058 = vpow2.f32 %v1034_v49  ;;  %v1926_v44 = vpop.f32.mrb[10].mxu0 }
 0x1b4   : > { %v2049_v10 = vpop.eup %2048  ;;  %v1036_v53 = vmul.f32 1.442695, %v1011_v51  ;;  %v2752_v32 = vpop.f32.mrb[11].mxu0 }
 0x1b5   : > { %v1038_v54 = vmul.f32 1.442695, %v1012_v46  ;;  %v2719_v56 = vpop.xlane.xlu1 %988  ;;  %v1056_v57 = vsel %vm953_vm1, %v2049_v10, 0.0  ;;  %v2051_v59 = vpop.eup %2050 }
 0x1b6   : > { %2060 = vpow2.f32 %v1036_v53  ;;  %v1013_v48 = vsub.f32 %v2643_v61, %v2719_v56  ;;  %1057 = vadd.xlane.f32.xlu0 %v1056_v57  ;;  %v2724_v60 = vpop.xlane.xlu0 %991  ;;  %v1062_v2 = vsel %vm953_vm1, %v2051_v59, 0.0  ;;  %v2754_v47 = vpop.f32.mrb[12].mxu0 }
 0x1b7   : > { %v1014_v63 = vsub.f32 %v2651_v3, %v2724_v60  ;;  %2062 = vpow2.f32 %v1038_v54  ;;  %v2756_v49 = vpop.f32.mrb[13].mxu0 }
 0x1b8   : > { %v2053_v58 = vpop.eup %2052  ;;  %v1040_v12 = vmul.f32 1.442695, %v1013_v48  ;;  %v2758_v50 = vpop.f32.mrb[14].mxu0 }
 0x1b9   : > { %v1042_v0 = vmul.f32 1.442695, %v1014_v63  ;;  %v2728_v14 = vpop.xlane.xlu1 %994  ;;  %v1065_v1 = vsel %vm953_vm1, %v2053_v58, 0.0  ;;  %v2055_v5 = vpop.eup %2054 }
 0x1ba   : > { %2064 = vpow2.f32 %v1040_v12  ;;  %v1015_v61 = vsub.f32 %v2656_v9, %v2728_v14  ;;  %1066 = vadd.xlane.f32.xlu1 %v1065_v1  ;;  %1063 = vadd.xlane.f32.xlu0 %v1062_v2  ;;  %v2734_v21 = vpop.xlane.xlu0 %997  ;;  %v1068_v25 = vsel %vm953_vm1, %v2055_v5, 0.0  ;;  %v2760_v51 = vpop.f32.mrb[15].mxu0 }
 0x1bb   : > { %v1016_v3 = vsub.f32 %v2661_v16, %v2734_v21  ;;  %2066 = vpow2.f32 %v1042_v0  ;;  %v2762_v29 = vpop.f32.mrb[16].mxu0 }
 0x1bc   : > { %v2057_v11 = vpop.eup %2056  ;;  %v1044_v15 = vmul.f32 1.442695, %v1015_v61  ;;  %v2764_v46 = vpop.f32.mrb[17].mxu0 }
 0x1bd   : > { %v1046_v18 = vmul.f32 1.442695, %v1016_v3  ;;  %v2738_v22 = vpop.xlane.xlu1 %1000  ;;  %v1071_v23 = vsel %vm953_vm1, %v2057_v11, 0.0  ;;  %v2059_v17 = vpop.eup %2058  ;;  %v2787_v3 = vld [vmem:[%s3247_s7] ss:$0 sm:$0xff] }
 0x1be   : > { %2068 = vpow2.f32 %v1044_v15  ;;  %v1017_v9 = vsub.f32 %v2666_v20, %v2738_v22  ;;  %1072 = vadd.xlane.f32.xlu1 %v1071_v23  ;;  %1069 = vadd.xlane.f32.xlu0 %v1068_v25  ;;  %v1074_v28 = vsel %vm953_vm1, %v2059_v17, 0.0  ;;  %v2766_v10 = vpop.f32.mrb[18].mxu0 }
 0x1bf   : > { %2070 = vpow2.f32 %v1046_v18  ;;  %v2768_v53 = vpop.f32.mrb[19].mxu0  ;;  %v2793_v18 = vld [vmem:[%s3248_s8] ss:$0 sm:$0xff] }
 0x1c0   : > { %v2061_v33 = vpop.eup %2060  ;;  %v1048_v16 = vmul.f32 1.442695, %v1017_v9  ;;  %v2770_v54 = vpop.f32.mrb[20].mxu0 }
 0x1c1   : > { %v1077_v27 = vsel %vm953_vm1, %v2061_v33, 0.0  ;;  %v2063_v30 = vpop.eup %2062  ;;  %v2772_v57 = vpop.f32.mrb[21].mxu0 }
 0x1c2   : > { %2072 = vpow2.f32 %v1048_v16  ;;  %1078 = vadd.xlane.f32.xlu1 %v1077_v27  ;;  %1075 = vadd.xlane.f32.xlu0 %v1074_v28  ;;  %v1080_v4 = vsel %vm953_vm1, %v2063_v30, 0.0  ;;  %v2774_v59 = vpop.f32.mrb[22].mxu0  ;;  %v2803_v28 = vld [vmem:[%s3246_s6] ss:$0 sm:$0xff] }
 0x1c3   : > { %v2776_v48 = vpop.f32.mrb[23].mxu0 }
 0x1c4   : > { %v2065_v42 = vpop.eup %2064 }
 0x1c5   : > { %v1083_v35 = vsel %vm953_vm1, %v2065_v42, 0.0  ;;  %v2067_v36 = vpop.eup %2066 }
 0x1c6   : > { %1084 = vadd.xlane.f32.xlu1 %v1083_v35  ;;  %1081 = vadd.xlane.f32.xlu0 %v1080_v4  ;;  %v1086_v38 = vsel %vm953_vm1, %v2067_v36, 0.0 }
 0x1c8   : > { %v2069_v20 = vpop.eup %2068 }
 0x1c9   : > { %v1089_v55 = vsel %vm953_vm1, %v2069_v20, 0.0  ;;  %v2071_v62 = vpop.eup %2070 }
 0x1ca   : > { %1090 = vadd.xlane.f32.xlu1 %v1089_v55  ;;  %1087 = vadd.xlane.f32.xlu0 %v1086_v38  ;;  %v1092_v13 = vsel %vm953_vm1, %v2071_v62, 0.0  ;;  %v2815_v38 = vadd.f32 %v1923_v6, %v2803_v28  ;;  %v2829_v6 = vadd.f32 %v2803_v28, %v2752_v32 }
 0x1cc   : > { %v2073_v39 = vpop.eup %2072 }
 0x1cd   : > { %v1095_v40 = vsel %vm953_vm1, %v2073_v39, 0.0 }
 0x1ce   : > { %1096 = vadd.xlane.f32.xlu1 %v1095_v40  ;;  %1093 = vadd.xlane.f32.xlu0 %v1092_v13  ;;  %v2823_v40 = vadd.f32 %v1926_v44, %v2803_v28 }
 0x23b   : > { %v1055_v63 = vpop.xlane.xlu1 %1054 }
 0x23c   : > { %2074 = vlog2.f32 %v1055_v63 }
 0x23f   : > { %v1052_v58 = vpop.xlane.xlu0 %1051 }
 0x240   : > { %v1061_v12 = vpop.xlane.xlu1 %1060  ;;  %2076 = vlog2.f32 %v1052_v58 }
 0x241   : > { %2078 = vlog2.f32 %v1061_v12 }
 0x243   : > { %v1058_v0 = vpop.xlane.xlu0 %1057 }
 0x244   : > { %2080 = vlog2.f32 %v1058_v0 }
 0x246   : > { %v2075_v1 = vpop.eup %2074 }
 0x247   : > { %v1101_v2 = vmul.f32 0.6931472, %v2075_v1  ;;  %v1067_v5 = vpop.xlane.xlu1 %1066  ;;  %v1064_v61 = vpop.xlane.xlu0 %1063 }
 0x248   : > { %2082 = vlog2.f32 %v1067_v5 }
 0x249   : > { %v1131_v11 = vadd.f32 %v1101_v2, %v2672_v24  ;;  %2084 = vlog2.f32 %v1064_v61  ;;  %v2842_v2 = vadd.f32 %v2803_v28, %v2756_v49 }
 0x24a   : > { %v2077_v15 = vpop.eup %2076 }
 0x24b   : > { %v2079_v23 = vpop.eup %2078  ;;  %v1315_v25 = vmul.f32 %v2787_v3, %v1131_v11  ;;  %1546 = vst.msk [vmem:[%s2782_s24 + $0x8] sm:$0xff] %vm1544_vm2, %v1131_v11  ;;  %v1099_v17 = vmul.f32 0.6931472, %v2077_v15  ;;  %v1073_v9 = vpop.xlane.xlu1 %1072  ;;  %v2854_v15 = vadd.f32 %v2803_v28, %v2760_v51 }
 0x24c   : > { %v1070_v33 = vpop.xlane.xlu0 %1069  ;;  %v1105_v16 = vmul.f32 0.6931472, %v2079_v23  ;;  %2086 = vlog2.f32 %v1073_v9 }
 0x24d   : > { %v1337_v24 = vsub.f32 %v2793_v18, %v1315_v25  ;;  %v1130_v27 = vadd.f32 %v1099_v17, %v2676_v19  ;;  %2088 = vlog2.f32 %v1070_v33  ;;  %v2860_v25 = vadd.f32 %v2762_v29, %v2803_v28 }
 0x24e   : > { %v2081_v30 = vpop.eup %2080  ;;  %v1133_v42 = vadd.f32 %v1105_v16, %v2678_v26  ;;  %v2818_v26 = vadd.f32 %v2803_v28, %v1227_v7  ;;  %v2833_v7 = vadd.f32 %v2754_v47, %v2803_v28  ;;  %v2848_v47 = vadd.f32 %v2758_v50, %v2803_v28 }
 0x24f   : > { %v2806_v35 = vadd.f32 1e-16, %v1337_v24  ;;  %v1314_v4 = vmul.f32 %v2787_v3, %v1130_v27  ;;  %1545 = vst.msk [vmem:[%s2782_s24] sm:$0xff] %vm1544_vm2, %v1130_v27  ;;  %v1103_v36 = vmul.f32 0.6931472, %v2081_v30  ;;  %v1079_v20 = vpop.xlane.xlu1 %1078  ;;  %v2864_v50 = vadd.f32 %v2803_v28, %v2764_v46 }
 0x250   : > { %v1076_v55 = vpop.xlane.xlu0 %1075  ;;  %v1317_v19 = vmul.f32 %v2787_v3, %v1133_v42  ;;  %1548 = vst.msk [vmem:[%s2782_s24 + $0x18] sm:$0xff] %vm1544_vm2, %v1133_v42  ;;  %2090 = vlog2.f32 %v1079_v20  ;;  %v2876_v46 = vadd.f32 %v2766_v10, %v2803_v28  ;;  %v2880_v16 = vadd.f32 %v2803_v28, %v2768_v53 }
 0x251   : > { %v1336_v62 = vsub.f32 %v2793_v18, %v1314_v4  ;;  %v1132_v39 = vadd.f32 %v1103_v36, %v2684_v31  ;;  %2092 = vlog2.f32 %v1076_v55  ;;  %v2885_v27 = vadd.f32 %v2770_v54, %v2803_v28 }
 0x252   : > { %v2083_v13 = vpop.eup %2082  ;;  %v1339_v63 = vsub.f32 %v2793_v18, %v1317_v19  ;;  %2094 = vrsqrt.f32 %v2806_v35  ;;  %v2889_v30 = vadd.f32 %v2803_v28, %v2772_v57  ;;  %vm1377_vm3 = vcmp.eq.f32.partialorder %v2806_v35, inf }
 0x253   : > { %v2085_v58 = vpop.eup %2084  ;;  %v2835_v12 = vadd.f32 1e-16, %v1336_v62  ;;  %v1316_v31 = vmul.f32 %v2787_v3, %v1132_v39  ;;  %1547 = vst.msk [vmem:[%s2782_s24 + $0x10] sm:$0xff] %vm1544_vm2, %v1132_v39  ;;  %v1109_v44 = vmul.f32 0.6931472, %v2083_v13  ;;  %v1085_v0 = vpop.xlane.xlu1 %1084  ;;  %vm1379_vm4 = vcmp.eq.f32.partialorder %v2806_v35, 0.0 }
 0x254   : > { %v1082_v1 = vpop.xlane.xlu0 %1081  ;;  %v2844_v32 = vadd.f32 1e-16, %v1339_v63  ;;  %v1107_v5 = vmul.f32 0.6931472, %v2085_v58  ;;  %2096 = vlog2.f32 %v1085_v0  ;;  %v1380_v55 = vand.u32 2147483648, %v2806_v35  ;;  %v1481_v58 = vld [vmem:[%s2905_s26 + $0x8] sm:$0xff] }
 0x255   : > { %v1338_v61 = vsub.f32 %v2793_v18, %v1316_v31  ;;  %v1135_v11 = vadd.f32 %v1109_v44, %v2692_v45  ;;  %2098 = vlog2.f32 %v1082_v1  ;;  %vm1370_vm5 = vcmp.eq.f32.partialorder %v2835_v12, inf }
 0x256   : > { %v2087_v49 = vpop.eup %2086  ;;  %v1134_v23 = vadd.f32 %v1107_v5, %v2688_v34  ;;  %2100 = vrsqrt.f32 %v2835_v12  ;;  %vm1372_vm6 = vcmp.eq.f32.partialorder %v2835_v12, 0.0  ;;  %v1373_v31 = vand.u32 2147483648, %v2835_v12 }
 0x257   : > { %v2089_v45 = vpop.eup %2088  ;;  %v2866_v17 = vadd.f32 1e-16, %v1338_v61  ;;  %v1319_v9 = vmul.f32 %v2787_v3, %v1135_v11  ;;  %1550 = vst.msk [vmem:[%s2782_s24 + $0x28] sm:$0xff] %vm1544_vm2, %v1135_v11  ;;  %v1113_v51 = vmul.f32 0.6931472, %v2087_v49  ;;  %v1091_v33 = vpop.xlane.xlu1 %1090  ;;  %2102 = vrsqrt.f32 %v2844_v32 }
 0x258   : > { %v1088_v34 = vpop.xlane.xlu0 %1087  ;;  %1549 = vst.msk [vmem:[%s2782_s24 + $0x20] sm:$0xff] %vm1544_vm2, %v1134_v23  ;;  %v1111_v29 = vmul.f32 0.6931472, %v2089_v45  ;;  %2104 = vlog2.f32 %v1091_v33  ;;  %v1318_v54 = vmul.f32 %v2787_v3, %v1134_v23  ;;  %vm1391_vm7 = vcmp.eq.f32.partialorder %v2844_v32, inf }
 0x259   : > { %v1137_v24 = vadd.f32 %v1113_v51, %v2700_v41  ;;  %2106 = vlog2.f32 %v1088_v34  ;;  %v1341_v10 = vsub.f32 %v2793_v18, %v1319_v9  ;;  %v2896_v41 = vadd.f32 %v2774_v59, %v2803_v28 }
 0x25a   : > { %v2091_v42 = vpop.eup %2090  ;;  %v1136_v4 = vadd.f32 %v1111_v29, %v2696_v37  ;;  %2108 = vrsqrt.f32 %v2866_v17  ;;  %v1340_v0 = vsub.f32 %v2793_v18, %v1318_v54  ;;  %vm1393_vm8 = vcmp.eq.f32.partialorder %v2844_v32, 0.0 }
 0x25b   : > { %v2093_v53 = vpop.eup %2092  ;;  %1552 = vst.msk [vmem:[%s2782_s24 + $0x38] sm:$0xff] %vm1544_vm2, %v1137_v24  ;;  %v1117_v57 = vmul.f32 0.6931472, %v2091_v42  ;;  %v1097_v36 = vpop.xlane.xlu1 %1096  ;;  %v2917_v13 = vadd.f32 1e-16, %v1341_v10  ;;  %v1321_v5 = vmul.f32 %v2787_v3, %v1137_v24  ;;  %v1394_v33 = vand.u32 2147483648, %v2844_v32 }
 0x25c   : > { %v1094_v20 = vpop.xlane.xlu0 %1093  ;;  %v2095_v37 = vpop.eup %2094  ;;  %1551 = vst.msk [vmem:[%s2782_s24 + $0x30] sm:$0xff] %vm1544_vm2, %v1136_v4  ;;  %v1115_v59 = vmul.f32 0.6931472, %v2093_v53  ;;  %2110 = vlog2.f32 %v1097_v36  ;;  %v1320_v61 = vmul.f32 %v2787_v3, %v1136_v4  ;;  %vm1384_vm9 = vcmp.eq.f32.partialorder %v2866_v17, inf  ;;  %v1480_v53 = vld [vmem:[%s2905_s26] sm:$0xff] }
 0x25d   : > { %v1139_v19 = vadd.f32 %v1117_v57, %v2709_v8  ;;  %2112 = vlog2.f32 %v1094_v20  ;;  %v1376_v62 = vmul.f32 %v2095_v37, %v2806_v35  ;;  %v2947_v42 = vadd.f32 1e-16, %v1340_v0  ;;  %v1483_v20 = vld [vmem:[%s2905_s26 + $0x18] sm:$0xff] }
 0x25e   : > { %v2097_v39 = vpop.eup %2096  ;;  %v1138_v63 = vadd.f32 %v1115_v59, %v2705_v43  ;;  %2114 = vrsqrt.f32 %v2917_v13  ;;  %v1342_v54 = vsub.f32 %v2793_v18, %v1320_v61  ;;  %vm1386_vm10 = vcmp.eq.f32.partialorder %v2866_v17, 0.0 }
 0x25f   : > { %v2099_v44 = vpop.eup %2098  ;;  %1554 = vst.msk [vmem:[%s2782_s24 + $0x48] sm:$0xff] %vm1544_vm2, %v1139_v19  ;;  %v1121_v8 = vmul.f32 0.6931472, %v2097_v39  ;;  %v1378_v1 = vsel %vm1377_vm3, %v2806_v35, %v1376_v62  ;;  %2116 = vrsqrt.f32 %v2947_v42  ;;  %vm1405_vm11 = vcmp.eq.f32.partialorder %v2917_v13, inf }
 0x260   : > { %v2101_v43 = vpop.eup %2100  ;;  %1553 = vst.msk [vmem:[%s2782_s24 + $0x40] sm:$0xff] %vm1544_vm2, %v1138_v63  ;;  %v1119_v11 = vmul.f32 0.6931472, %v2099_v44  ;;  %v1381_v49 = vsel %vm1379_vm4, %v1380_v55, %v1378_v1  ;;  %v1322_v62 = vmul.f32 %v2787_v3, %v1138_v63  ;;  %v1387_v63 = vand.u32 2147483648, %v2866_v17 }
 0x261   : > { %v2103_v23 = vpop.eup %2102  ;;  %v1141_v45 = vadd.f32 %v1121_v8, %v2719_v56  ;;  %v1497_v9 = vmul.f32 %v1481_v58, %v1381_v49  ;;  %v1369_v51 = vmul.f32 %v2101_v43, %v2835_v12  ;;  %v1323_v56 = vmul.f32 %v2787_v3, %v1139_v19 }
 0x262   : > { %v2105_v34 = vpop.eup %2104  ;;  %v1140_v29 = vadd.f32 %v1119_v11, %v2715_v52  ;;  %v1390_v24 = vmul.f32 %v2103_v23, %v2844_v32  ;;  %v1343_v52 = vsub.f32 %v2793_v18, %v1321_v5  ;;  %v2992_v23 = vadd.f32 1e-16, %v1342_v54 }
 0x263   : > { %v2107_v35 = vpop.eup %2106  ;;  %1556 = vst.msk [vmem:[%s2782_s24 + $0x58] sm:$0xff] %vm1544_vm2, %v1141_v45  ;;  %v1125_v10 = vmul.f32 0.6931472, %v2105_v34  ;;  %v1513_v4 = vadd.f32 %v1497_v9, %v2815_v38  ;;  %v1371_v36 = vsel %vm1370_vm5, %v2835_v12, %v1369_v51  ;;  %v1345_v12 = vsub.f32 %v2793_v18, %v1323_v56  ;;  %v1482_v9 = vld [vmem:[%s2905_s26 + $0x10] sm:$0xff] }
 0x264   : > { %1555 = vst.msk [vmem:[%s2782_s24 + $0x50] sm:$0xff] %vm1544_vm2, %v1140_v29  ;;  %v1123_v57 = vmul.f32 0.6931472, %v2107_v35  ;;  %v2109_v37 = vpop.eup %2108  ;;  %v1374_v38 = vsel %vm1372_vm6, %v1373_v31, %v1371_v36  ;;  %v1392_v55 = vsel %vm1391_vm7, %v2844_v32, %v1390_v24  ;;  %v1325_v31 = vmul.f32 %v2787_v3, %v1141_v45 }
 0x265   : > { %v1143_v59 = vadd.f32 %v1125_v10, %v2728_v14  ;;  %1529 = vst [vmem:[%s2964_s29 + $0x8] sm:$0xff] %v1513_v4  ;;  %v1496_v14 = vmul.f32 %v1480_v53, %v1374_v38  ;;  %v1395_v58 = vsel %vm1393_vm8, %v1394_v33, %v1392_v55  ;;  %v1324_v1 = vmul.f32 %v2787_v3, %v1140_v29 }
 0x266   : > { %v2111_v19 = vpop.eup %2110  ;;  %v1142_v39 = vadd.f32 %v1123_v57, %v2724_v60  ;;  %v1499_v8 = vmul.f32 %v1483_v20, %v1395_v58  ;;  %v1383_v11 = vmul.f32 %v2109_v37, %v2866_v17  ;;  %v2990_v49 = vadd.f32 1e-16, %v1343_v52  ;;  %v1485_v52 = vld [vmem:[%s2905_s26 + $0x28] sm:$0xff] }
 0x267   : > { %v2113_v44 = vpop.eup %2112  ;;  %1558 = vst.msk [vmem:[%s2782_s24 + $0x68] sm:$0xff] %vm1544_vm2, %v1143_v59  ;;  %v1129_v0 = vmul.f32 0.6931472, %v2111_v19  ;;  %v1512_v32 = vadd.f32 %v1496_v14, %v2818_v26  ;;  %v1327_v43 = vmul.f32 %v2787_v3, %v1143_v59  ;;  %v2998_v51 = vadd.f32 1e-16, %v1345_v12 }
 0x268   : > { %1557 = vst.msk [vmem:[%s2782_s24 + $0x60] sm:$0xff] %vm1544_vm2, %v1142_v39  ;;  %v1127_v60 = vmul.f32 0.6931472, %v2113_v44  ;;  %v1515_v61 = vadd.f32 %v1499_v8, %v2823_v40  ;;  %v1326_v45 = vmul.f32 %v2787_v3, %v1142_v39  ;;  %v1344_v33 = vsub.f32 %v2793_v18, %v1322_v62  ;;  %v2115_v34 = vpop.eup %2114 }
 0x269   : > { %v1145_v5 = vadd.f32 %v1129_v0, %v2738_v22  ;;  %1528 = vst [vmem:[%s2964_s29] sm:$0xff] %v1512_v32  ;;  %v1347_v22 = vsub.f32 %v2793_v18, %v1325_v31  ;;  %v1385_v40 = vsel %vm1384_vm9, %v2866_v17, %v1383_v11  ;;  %v1346_v35 = vsub.f32 %v2793_v18, %v1324_v1  ;;  %v1484_v31 = vld [vmem:[%s2905_s26 + $0x20] sm:$0xff] }
 0x26a   : > { %v1144_v26 = vadd.f32 %v1127_v60, %v2734_v21  ;;  %1531 = vst [vmem:[%s2964_s29 + $0x18] sm:$0xff] %v1515_v61  ;;  %v1388_v24 = vsel %vm1386_vm10, %v1387_v63, %v1385_v40  ;;  %v1349_v56 = vsub.f32 %v2793_v18, %v1327_v43  ;;  %v1404_v4 = vmul.f32 %v2115_v34, %v2917_v13  ;;  %v1487_v63 = vld [vmem:[%s2905_s26 + $0x38] sm:$0xff]  ;;  %v1486_v34 = vld [vmem:[%s2905_s26 + $0x30] sm:$0xff] }
 0x26b   : > { %1560 = vst.msk [vmem:[%s2782_s24 + $0x78] sm:$0xff] %vm1544_vm2, %v1145_v5  ;;  %v1329_v29 = vmul.f32 %v2787_v3, %v1145_v5  ;;  %v1498_v10 = vmul.f32 %v1482_v9, %v1388_v24  ;;  %v1348_v53 = vsub.f32 %v2793_v18, %v1326_v45  ;;  %2118 = vrsqrt.f32 %v2990_v49 }
 0x26c   : > { %v1328_v21 = vmul.f32 %v2787_v3, %v1144_v26  ;;  %1559 = vst.msk [vmem:[%s2782_s24 + $0x70] sm:$0xff] %vm1544_vm2, %v1144_v26  ;;  %v1408_v3 = vand.u32 2147483648, %v2917_v13  ;;  %v3023_v17 = vadd.f32 1e-16, %v1344_v33  ;;  %v1406_v57 = vsel %vm1405_vm11, %v2917_v13, %v1404_v4  ;;  %s1752_s24 = sshll.u32 %s2286_s21, 11  ;;  %s3199_s21 = scalar_lea.sflag [#allocation3], %s395_s16 }
 0x26d   : > { %v1514_v54 = vadd.f32 %v1498_v10, %v2829_v6  ;;  %vm1407_vm12 = vcmp.eq.f32.partialorder %v2917_v13, 0.0  ;;  %v3028_v36 = vadd.f32 1e-16, %v1347_v22  ;;  %v1351_v20 = vsub.f32 %v2793_v18, %v1329_v29  ;;  %s3188_s15 = scalar_lea.hbm %s3250_s10, %s1752_s24 }
 0x26e   : > { %v1350_v37 = vsub.f32 %v2793_v18, %v1328_v21  ;;  %v1409_v59 = vsel %vm1407_vm12, %v1408_v3, %v1406_v57  ;;  %v3032_v38 = vadd.f32 1e-16, %v1346_v35  ;;  %2120 = vrsqrt.f32 %v2992_v23  ;;  %v1489_v35 = vld [vmem:[%s2905_s26 + $0x48] sm:$0xff] }
 0x26f   : > { %1530 = vst [vmem:[%s2964_s29 + $0x10] sm:$0xff] %v1514_v54  ;;  %v1501_v55 = vmul.f32 %v1485_v52, %v1409_v59  ;;  %v3038_v6 = vadd.f32 %v2803_v28, %v2776_v48  ;;  %v3040_v19 = vadd.f32 1e-16, %v1349_v56  ;;  %v3042_v13 = vadd.f32 1e-16, %v1348_v53  ;;  %v1488_v52 = vld [vmem:[%s2905_s26 + $0x40] sm:$0xff] }
 0x270   : > { %vm1398_vm13 = vcmp.eq.f32.partialorder %v2947_v42, inf  ;;  %2122 = vrsqrt.f32 %v2998_v51  ;;  %vm1400_vm14 = vcmp.eq.f32.partialorder %v2947_v42, 0.0  ;;  %v1401_v62 = vand.u32 2147483648, %v2947_v42 }
 0x271   : > { %v1517_v18 = vadd.f32 %v1501_v55, %v2833_v7  ;;  %2124 = vrsqrt.f32 %v3023_v17  ;;  %v3050_v39 = vadd.f32 1e-16, %v1351_v20  ;;  %v3052_v48 = vadd.f32 1e-16, %v1350_v37  ;;  %v2117_v7 = vpop.eup %2116 }
 0x272   : > { %vm1419_vm15 = vcmp.eq.f32.partialorder %v2990_v49, inf  ;;  %2126 = vrsqrt.f32 %v3028_v36  ;;  %vm1421_vm0 = vcmp.eq.f32.partialorder %v2990_v49, 0.0  ;;  %v1422_v28 = vand.u32 2147483648, %v2990_v49 }
 0x273   : > { %1533 = vst [vmem:[%s2964_s29 + $0x28] sm:$0xff] %v1517_v18  ;;  %vm1412_vm1 = vcmp.eq.f32.partialorder %v2992_v23, inf  ;;  %2128 = vrsqrt.f32 %v3032_v38  ;;  %vm1414_vm2 = vcmp.eq.f32.partialorder %v2992_v23, 0.0  ;;  %v1415_v14 = vand.u32 2147483648, %v2992_v23 }
 0x274   : > { %vm1433_vm3 = vcmp.eq.f32.partialorder %v2998_v51, inf  ;;  %2130 = vrsqrt.f32 %v3040_v19  ;;  %v1397_v58 = vmul.f32 %v2117_v7, %v2947_v42  ;;  %vm1435_vm4 = vcmp.eq.f32.partialorder %v2998_v51, 0.0 }
 0x275   : > { %v1436_v44 = vand.u32 2147483648, %v2998_v51  ;;  %vm1426_vm5 = vcmp.eq.f32.partialorder %v3023_v17, inf  ;;  %2132 = vrsqrt.f32 %v3042_v13  ;;  %v2119_v12 = vpop.eup %2118  ;;  %vm1428_vm6 = vcmp.eq.f32.partialorder %v3023_v17, 0.0 }
 0x276   : > { %v1429_v0 = vand.u32 2147483648, %v3023_v17  ;;  %vm1447_vm7 = vcmp.eq.f32.partialorder %v3028_v36, inf  ;;  %2134 = vrsqrt.f32 %v3050_v39  ;;  %v1399_v8 = vsel %vm1398_vm13, %v2947_v42, %v1397_v58 }
 0x277   : > { %v1418_v1 = vmul.f32 %v2119_v12, %v2990_v49  ;;  %vm1449_vm8 = vcmp.eq.f32.partialorder %v3028_v36, 0.0  ;;  %v1450_v60 = vand.u32 2147483648, %v3028_v36  ;;  %v1402_v32 = vsel %vm1400_vm14, %v1401_v62, %v1399_v8 }
 0x278   : > { %vm1440_vm9 = vcmp.eq.f32.partialorder %v3032_v38, inf  ;;  %vm1442_vm10 = vcmp.eq.f32.partialorder %v3032_v38, 0.0  ;;  %2136 = vrsqrt.f32 %v3052_v48  ;;  %v2121_v43 = vpop.eup %2120  ;;  %v1500_v5 = vmul.f32 %v1484_v31, %v1402_v32  ;;  %v1493_v31 = vld [vmem:[%s2905_s26 + $0x68] sm:$0xff] }
 0x279   : > { %v1420_v61 = vsel %vm1419_vm15, %v2990_v49, %v1418_v1  ;;  %v1443_v11 = vand.u32 2147483648, %v3032_v38  ;;  %vm1461_vm11 = vcmp.eq.f32.partialorder %v3040_v19, inf  ;;  %v1411_v26 = vmul.f32 %v2121_v43, %v2992_v23 }
 0x27a   : > { %v2123_v42 = vpop.eup %2122  ;;  %v1423_v45 = vsel %vm1421_vm0, %v1422_v28, %v1420_v61  ;;  %vm1463_vm12 = vcmp.eq.f32.partialorder %v3040_v19, 0.0  ;;  %v1464_v9 = vand.u32 2147483648, %v3040_v19  ;;  %v1516_v22 = vadd.f32 %v1500_v5, %v2842_v2  ;;  %v1490_v28 = vld [vmem:[%s2905_s26 + $0x50] sm:$0xff]  ;;  %v1492_v5 = vld [vmem:[%s2905_s26 + $0x60] sm:$0xff] }
 0x27b   : > { %v2125_v33 = vpop.eup %2124  ;;  %v1503_v40 = vmul.f32 %v1487_v63, %v1423_v45  ;;  %v1432_v29 = vmul.f32 %v2123_v42, %v2998_v51  ;;  %vm1454_vm13 = vcmp.eq.f32.partialorder %v3042_v13, inf  ;;  %v1457_v49 = vand.u32 2147483648, %v3042_v13  ;;  %v1495_v42 = vld [vmem:[%s2905_s26 + $0x78] sm:$0xff]  ;;  %v1494_v45 = vld [vmem:[%s2905_s26 + $0x70] sm:$0xff] }
 0x27c   : > { %v2127_v21 = vpop.eup %2126  ;;  %v1413_v24 = vsel %vm1412_vm1, %v2992_v23, %v1411_v26  ;;  %v1425_v56 = vmul.f32 %v2125_v33, %v3023_v17  ;;  %vm1456_vm14 = vcmp.eq.f32.partialorder %v3042_v13, 0.0  ;;  %vm1475_vm15 = vcmp.eq.f32.partialorder %v3050_v39, inf  ;;  %1532 = vst [vmem:[%s2964_s29 + $0x20] sm:$0xff] %v1516_v22  ;;  %v1491_v23 = vld [vmem:[%s2905_s26 + $0x58] sm:$0xff]  ;;  %s2142_s26 = sshll.u32 %s2202_s25, 4  ;;  %s2143_s26 = int_to_ptr.vmem [resolvable:$false] %s2142_s26 }
 0x27d   : > { %v1478_v2 = vand.u32 2147483648, %v3050_v39  ;;  %vm1468_vm0 = vcmp.eq.f32.partialorder %v3052_v48, inf  ;;  %v2129_v10 = vpop.eup %2128  ;;  %v1519_v4 = vadd.f32 %v1503_v40, %v2848_v47  ;;  %v1416_v53 = vsel %vm1414_vm2, %v1415_v14, %v1413_v24  ;;  %s2144_s12 = scalar_lea.vmem %s2143_s26, 4096  ;;  %p2145_p0 = scmp.lt.s32.totalorder %s3190_s30, %s2143_s26 }
 0x27e   : > { %v1434_v3 = vsel %vm1433_vm3, %v2998_v51, %v1432_v29  ;;  %v1446_v54 = vmul.f32 %v2127_v21, %v3028_v36  ;;  %vm1477_vm1 = vcmp.eq.f32.partialorder %v3050_v39, 0.0  ;;  %v2131_v57 = vpop.eup %2130  ;;  %v1502_v20 = vmul.f32 %v1486_v34, %v1416_v53  ;;  %p2146_p1 = scmp.lt.s32.totalorder %s2144_s12, %s2138_s22 }
 0x27f   : > { %v1437_v37 = vsel %vm1435_vm4, %v1436_v44, %v1434_v3  ;;  %v1427_v47 = vsel %vm1426_vm5, %v3023_v17, %v1425_v56  ;;  %v1439_v59 = vmul.f32 %v2129_v10, %v3032_v38  ;;  %v2133_v55 = vpop.eup %2132  ;;  %1535 = vst [vmem:[%s2964_s29 + $0x38] sm:$0xff] %v1519_v4  ;;  %v1460_v7 = vmul.f32 %v2131_v57, %v3040_v19 }
 0x280   : > { %v1505_v18 = vmul.f32 %v1489_v35, %v1437_v37  ;;  %v1430_v62 = vsel %vm1428_vm6, %v1429_v0, %v1427_v47  ;;  %v1448_v51 = vsel %vm1447_vm7, %v3028_v36, %v1446_v54  ;;  %v2135_v14 = vpop.eup %2134  ;;  %v1518_v58 = vadd.f32 %v1502_v20, %v2854_v15  ;;  %p2147_p2 = por %p2146_p1, %p2145_p0 }
 0x281   : > { %v1504_v44 = vmul.f32 %v1488_v52, %v1430_v62  ;;  %v1451_v12 = vsel %vm1449_vm8, %v1450_v60, %v1448_v51  ;;  %v1441_v17 = vsel %vm1440_vm9, %v3032_v38, %v1439_v59  ;;  %v1462_v15 = vsel %vm1461_vm11, %v3040_v19, %v1460_v7 }
 0x282   : > { %v1521_v0 = vadd.f32 %v1505_v18, %v2860_v25  ;;  %v1507_v8 = vmul.f32 %v1491_v23, %v1451_v12  ;;  %v1444_v1 = vsel %vm1442_vm10, %v1443_v11, %v1441_v17  ;;  %v2137_v36 = vpop.eup %2136  ;;  %1534 = vst [vmem:[%s2964_s29 + $0x30] sm:$0xff] %v1518_v58  ;;  %v1465_v25 = vsel %vm1463_vm12, %v1464_v9, %v1462_v15  ;;  %p2148_p3 = pnand %p2147_p2, %p2141_p13 }
 0x283   : > { %v1520_v60 = vadd.f32 %v1504_v44, %v2864_v50  ;;  %v1506_v32 = vmul.f32 %v1490_v28, %v1444_v1  ;;  %v1453_v63 = vmul.f32 %v2133_v55, %v3042_v13  ;;  %v1509_v43 = vmul.f32 %v1493_v31, %v1465_v25 }
 0x284   : > { %1537 = vst [vmem:[%s2964_s29 + $0x48] sm:$0xff] %v1521_v0  ;;  %v1523_v38 = vadd.f32 %v1507_v8, %v2876_v46  ;;  %v1474_v61 = vmul.f32 %v2135_v14, %v3050_v39  ;;  %v1467_v50 = vmul.f32 %v2137_v36, %v3052_v48  ;;  %vm1470_vm2 = vcmp.eq.f32.partialorder %v3052_v48, 0.0 }
 0x285   : > { %1536 = vst [vmem:[%s2964_s29 + $0x40] sm:$0xff] %v1520_v60  ;;  %v1522_v11 = vadd.f32 %v1506_v32, %v2880_v16  ;;  %v1455_v19 = vsel %vm1454_vm13, %v3042_v13, %v1453_v63  ;;  %v1471_v46 = vand.u32 2147483648, %v3052_v48  ;;  %v1525_v26 = vadd.f32 %v1509_v43, %v2885_v27 }
 0x286   : > { %1539 = vst [vmem:[%s2964_s29 + $0x58] sm:$0xff] %v1523_v38  ;;  %v1458_v9 = vsel %vm1456_vm14, %v1457_v49, %v1455_v19  ;;  %v1476_v16 = vsel %vm1475_vm15, %v3050_v39, %v1474_v61  ;;  %v1469_v33 = vsel %vm1468_vm0, %v3052_v48, %v1467_v50 }
 0x287   : > { %1538 = vst [vmem:[%s2964_s29 + $0x50] sm:$0xff] %v1522_v11  ;;  %v1508_v22 = vmul.f32 %v1492_v5, %v1458_v9  ;;  %v1479_v27 = vsel %vm1477_vm1, %v1478_v2, %v1476_v16  ;;  %v1472_v13 = vsel %vm1470_vm2, %v1471_v46, %v1469_v33  ;;  %1541 = vst [vmem:[%s2964_s29 + $0x68] sm:$0xff] %v1525_v26 }
 0x288   : > { %v1511_v40 = vmul.f32 %v1495_v42, %v1479_v27  ;;  %v1510_v34 = vmul.f32 %v1494_v45, %v1472_v13 }
 0x289   : > { %v1524_v29 = vadd.f32 %v1508_v22, %v2889_v30 }
 0x28a   : > { %v1527_v39 = vadd.f32 %v1511_v40, %v2896_v41  ;;  %v1526_v48 = vadd.f32 %v1510_v34, %v3038_v6 }
 0x28b   : > { %1540 = vst [vmem:[%s2964_s29 + $0x60] sm:$0xff] %v1524_v29 }
 0x28c   : > { %1543 = vst [vmem:[%s2964_s29 + $0x78] sm:$0xff] %v1527_v39  ;;  %1542 = vst [vmem:[%s2964_s29 + $0x70] sm:$0xff] %v1526_v48 }
 0x28d   : > { %2151 = shalt.err (!%p2148_p3)
}
 0x28e   : > { %s2152_s16 = scalar_lea.hbm %s3188_s15, 2048  ;;  %s2156_s13 = scalar_lea.hbm %s3250_s10, 4096 }
 0x28f   : > { %p2153_p4 = scmp.ne.s32.totalorder %s3188_s15, %s2152_s16  ;;  %p2157_p9 = scmp.lt.u32.totalorder %s3188_s15, %s3250_s10 }
 0x290   : > { %p2158_p10 = scmp.lt.u32.totalorder %s2156_s13, %s2152_s16  ;;  %p2160_p12 = scmp.lt.u32.totalorder %s2152_s16, %s3188_s15 }
 0x291   : > { %p2154_p7 = pnand %p2153_p4, %p2303_p5 }
 0x292   : > { %p2159_p11 = por %p2158_p10, %p2157_p9 }
 0x293   : > { %p2155_p8 = pneg %p2154_p7 }
 0x294   : > { %p2161_p13 = por %p2160_p12, %p2159_p11 }
 0x296   : > { %p2162_p0 = pnand %p2161_p13, %p2155_p8 }
 0x298   : > { %2165 = shalt.err (!%p2162_p0)
}
 0x299   : > { %s2203_s22 = smov 128   ;;  %s2204_s26 = smov 8  }
 0x29a   : > { %2001 = dma.vmem_to_hbm [thread:$0]  (%p2303_p5), %s3190_s30, 2048, %s3188_s15, %s3199_s21, %s2203_s22, %s2203_s22, %s2204_s26  }
 0x29b PF: > { %p2007_p1 = scmp.ge.s32.totalorder %s2200_s20, 2  ;;  %s1599_s12 = sand.u32 1, %s2188_s17  }
 0x29c   : > { %s1600_s16 = scalar_lea.sflag [#allocation3], %s1599_s12 }
 0x29d   : > { %p2004_p2 = pnand %p2007_p1, %p2307_p6 }
 0x29f   : > { %2183 = dma.done.wait (!%p2004_p2), %s1600_s16, 2048  }
 0x2a0   : > { %2185 = vsyncadd (!%p2004_p2), %s1600_s16, 4294965248  ;;  %s3255_s29 = sld [smem:[#allocation5_spill]]  ;;  %p22_p3 = scmp.ge.s32.totalorder %s2290_s23, 4  }
 0x2a1   : > { %s3256_s17 = smov %s2192_s18  ;;  %s3257_s18 = smov %s2196_s19 }
 0x2a2   : > { %s3259_s20 = smov %s2290_s23  ;;  %24 = sbr.rel (!%p22_p3) target bundleno = 3 (0x3), region = 110 }
 0x2a6   : > { %s3258_s19 = smov %s3255_s29 }
 0x2a9   :  { %1613 = vsyncpa [#allocation3], 1 }
 0x2aa   :  { %1615 = vsyncpa [#allocation3 + $0x1], 1 }

</bundles_post_ra>
